<compile_context>
chip_gen: v7x
topology: tpu7x:2x2x1
jax: 0.10.0
libtpu: 0.0.40
codegen_flags: <defaults>
</compile_context>

<pallas_src>
import jax
import jax.numpy as jnp
from jax.experimental import pallas as pl
from jax.experimental.pallas import tpu as pltpu

_EPS = 1e-5


def _make_kernel(N, H, W, Cin, Cout):
    NH = N * H
    WCi = W * Cin
    WCo = W * Cout

    def bn(v, p_ref, g_t, b_t, relu):
        # v: (NH, W*C) f32, lane-dense.  p_ref: (W*C, W*C) constant with
        # p[k,k'] = (k%C == k'%C) / (N*H*W); a row-sum followed by @p is the
        # per-channel batch mean already broadcast back to every w lane slot.
        mu_t = jnp.dot(jnp.sum(v, axis=0, keepdims=True), p_ref[...],
                       preferred_element_type=jnp.float32)
        d = v - mu_t                                         # mean-subtracted
        var_t = jnp.dot(jnp.sum(d * d, axis=0, keepdims=True), p_ref[...],
                        preferred_element_type=jnp.float32)
        y = d * (g_t * jax.lax.rsqrt(var_t + _EPS)) + b_t
        return jnp.maximum(y, 0.0) if relu else y

    def conv3x3(a_f32, w_ref, cb_t, wc_in):
        # 3x3 conv = three accumulated matmuls with block-banded weights
        # (kh = 0, 1, 2).  W padding lives in the band structure; H padding is
        # one zero row per sample (no padded scratch, no window gathers).
        a = a_f32.astype(jnp.bfloat16).reshape(N, H, wc_in)
        z = jnp.zeros((N, 1, wc_in), jnp.bfloat16)
        up = jnp.concatenate([z, a[:, :H - 1, :]], axis=1).reshape(NH, wc_in)  # row h-1
        dn = jnp.concatenate([a[:, 1:, :], z], axis=1).reshape(NH, wc_in)      # row h+1
        acc = jnp.dot(up, w_ref[0], preferred_element_type=jnp.float32)
        acc = acc + jnp.dot(a.reshape(NH, wc_in), w_ref[1],
                            preferred_element_type=jnp.float32)
        acc = acc + jnp.dot(dn, w_ref[2], preferred_element_type=jnp.float32)
        return acc + cb_t

    def kernel(x_ref, mavg_ref, pin_ref, pout_ref, gavg_ref, bavg_ref,
               g0_ref, b0_ref, w1_ref, cb1_ref, g1_ref, b1_ref,
               w2_ref, cb2_ref, sel_ref, out_ref, pool_ref):
        x_bf = x_ref[...]                                    # (NH, WCi) bf16
        xf = x_bf.astype(jnp.float32)

        # identity branch: 1x1 conv (block-diagonal matmul, no bias) -> BN
        ident = jnp.dot(x_bf, mavg_ref[...], preferred_element_type=jnp.float32)
        ident = bn(ident, pout_ref, gavg_ref[...], bavg_ref[...], relu=False)

        # pre-activation double-conv branch
        a0 = bn(xf, pin_ref, g0_ref[...], b0_ref[...], relu=True)
        c1 = conv3x3(a0, w1_ref, cb1_ref[...], WCi)
        a1 = bn(c1, pout_ref, g1_ref[...], b1_ref[...], relu=True)
        c2 = conv3x3(a1, w2_ref, cb2_ref[...], WCo)

        o = c2 + ident                                       # (NH, WCo) f32
        out_ref[...] = o.astype(out_ref.dtype)               # full-128-lane store

        # fused 2x2 max pool: H-pair max via sublane-split reduce, W-pair max
        # via two constant lane-selection matmuls (even / odd w blocks) + max.
        oh = jnp.max(o.reshape(NH // 2, 2, WCo), axis=1)     # (NH/2, WCo)
        ev = jnp.dot(oh, sel_ref[0], preferred_element_type=jnp.float32)
        od = jnp.dot(oh, sel_ref[1], preferred_element_type=jnp.float32)
        pool_ref[...] = jnp.maximum(ev, od).astype(pool_ref.dtype)

    return kernel


# ----------------------------- wrapper helpers ------------------------------

def _conv3x3_band_mats(w_pt, W):
    """(Co,Ci,3,3) conv weight -> (3, W*Ci, W*Co) block-banded matrices.

    mats[kh][win*Ci+ci, wout*Co+co] = w_pt[co, ci, kh, win-wout+1] whenever
    win-wout+1 is a valid kw; missing taps at the W borders == zero padding.
    """
    Ci = w_pt.shape[1]
    Co = w_pt.shape[0]
    wt = jnp.transpose(w_pt, (2, 3, 1, 0))                        # (kh,kw,Ci,Co)
    r = jnp.arange(W)
    ind = (r[None, :, None] == r[None, None, :]
           + jnp.arange(3)[:, None, None] - 1).astype(w_pt.dtype)  # (kw,win,wout)
    m = jnp.einsum('kab,hkio->haibo', ind, wt)                     # (kh,win,Ci,wout,Co)
    return m.reshape(3, W * Ci, W * Co).astype(jnp.bfloat16)


def _conv1x1_blockdiag(w_pt, W):
    """(Co,Ci,1,1) conv weight -> (W*Ci, W*Co) block-diagonal matrix."""
    Co, Ci = w_pt.shape[0], w_pt.shape[1]
    m = jnp.einsum('ab,io->aibo', jnp.eye(W, dtype=w_pt.dtype),
                   w_pt.reshape(Co, Ci).T)
    return m.reshape(W * Ci, W * Co).astype(jnp.bfloat16)


def _chan_mean_mat(C, W, count):
    """(W*C, W*C): row_sum(v) @ P == per-channel batch mean, broadcast to W*C."""
    k = jnp.arange(W * C)
    return ((k[:, None] % C) == (k[None, :] % C)).astype(jnp.float32) / count


def _pool_select_mats(C, W):
    """(2, W*C, (W/2)*C) lane-selection matrices for even / odd w lane blocks."""
    kin = jnp.arange(W * C)
    kout = jnp.arange((W // 2) * C)
    j, c = kout // C, kout % C
    even = (kin[:, None] == (2 * j * C + c)[None, :]).astype(jnp.float32)
    odd = (kin[:, None] == ((2 * j + 1) * C + c)[None, :]).astype(jnp.float32)
    return jnp.stack([even, odd])


# ------------------------------- entry points --------------------------------

def pre_activate_res_block_nhwc(x_nhwc, params):
    """NHWC-native entry point (preferred: zero layout transposes anywhere).

    Returns (down_sampled, full_res) in NHWC, bf16.
    """
    N, H, W, Cin = x_nhwc.shape
    Cout = params["w_avg_pt"].shape[0]
    assert H % 2 == 0 and W % 2 == 0
    NH, WCi, WCo = N * H, W * Cin, W * Cout

    # lane-dense view + constants (tiny, wrapper-side; hoist when jitting a
    # full model so they are built once, not per step).
    x_dense = x_nhwc.reshape(NH, WCi).astype(jnp.bfloat16)   # free reshape, bf16 I/O
    m_avg = _conv1x1_blockdiag(params["w_avg_pt"], W)
    w1 = _conv3x3_band_mats(params["w1_pt"], W)
    w2 = _conv3x3_band_mats(params["w2_pt"], W)
    p_in = _chan_mean_mat(Cin, W, N * H * W)
    p_out = _chan_mean_mat(Cout, W, N * H * W)
    sel = _pool_select_mats(Cout, W)
    tile = lambda v: jnp.tile(v.reshape(1, -1).astype(jnp.float32), (1, W))

    vspec = lambda: pl.BlockSpec(memory_space=pltpu.MemorySpace.VMEM)
    flops = 2 * N * H * W * Cout * (Cin + 9 * Cin + 9 * Cout)
    bytes_accessed = int(
        2 * (x_dense.size + NH * WCo + (NH // 2) * (WCo // 2)
             + m_avg.size + w1.size + w2.size)
        + 4 * (p_in.size + p_out.size + sel.size + 6 * WCo + 2 * WCi))

    # TODO(synk): for production UNet sizes, grid over H (1-row halo) / N with
    # a "parallel" leading axis (v7x: 2 TensorCores, tiles sized for its
    # 64 MiB VMEM; v6e: larger tiles / Buffered(3) inputs), switch BN to a
    # two-pass stats-then-normalize schedule across the grid, and switch the
    # convs back to a single im2col matmul once C >= 64.  At these toy shapes
    # a single VMEM-resident grid point is fastest.
    out_dense, pool_dense = pl.pallas_call(
        _make_kernel(N, H, W, Cin, Cout),
        out_shape=(
            jax.ShapeDtypeStruct((NH, WCo), jnp.bfloat16),                 # lane-dense full res
            jax.ShapeDtypeStruct((NH // 2, (W // 2) * Cout), jnp.bfloat16),  # lane-dense pooled
        ),
        in_specs=[vspec() for _ in range(15)],
        out_specs=(vspec(), vspec()),
        compiler_params=pltpu.CompilerParams(
            vmem_limit_bytes=32 * 1024 * 1024),
        cost_estimate=pl.CostEstimate(
            flops=flops,
            transcendentals=W * (Cin + 2 * Cout),
            bytes_accessed=bytes_accessed),
    )(x_dense, m_avg, p_in, p_out,
      tile(params["bn_avg_g"]), tile(params["bn_avg_b"]),
      tile(params["bn0_g"]), tile(params["bn0_b"]),
      w1, tile(params["b1"]),
      tile(params["bn1_g"]), tile(params["bn1_b"]),
      w2, tile(params["b2"]),
      sel)

    full = out_dense.reshape(N, H, W, Cout)        # free (contiguous) reshapes
    down = pool_dense.reshape(N, H // 2, W // 2, Cout)
    return down, full


def pre_activate_res_block(x_nchw, params):
    """NCHW adapter matching the PyTorch module interface.

    NOTE: if the surrounding model is NHWC end-to-end, call
    pre_activate_res_block_nhwc directly and these full-tensor HBM transpose
    passes disappear entirely.
    """
    x_nhwc = jnp.transpose(x_nchw, (0, 2, 3, 1))
    down, full = pre_activate_res_block_nhwc(x_nhwc, params)
    down = jnp.transpose(down, (0, 3, 1, 2)).astype(jnp.float32)
    full = jnp.transpose(full, (0, 3, 1, 2)).astype(jnp.float32)
    return down, full


# --------------------------------- reference ---------------------------------

def _reference(x_nchw, params):
    """Pure-JAX reference (NCHW), mirrors the PyTorch forward in training mode."""
    def bn_train(v, g, b):
        mu = jnp.mean(v, axis=(0, 2, 3), keepdims=True)
        var = jnp.mean((v - mu) ** 2, axis=(0, 2, 3), keepdims=True)
        return (v - mu) / jnp.sqrt(var + _EPS) * g.reshape(1, -1, 1, 1) + b.reshape(1, -1, 1, 1)

    def conv(v, w, b=None, pad=0):
        y = jax.lax.conv_general_dilated(v, w, (1, 1), [(pad, pad), (pad, pad)],
                                         dimension_numbers=("NCHW", "OIHW", "NCHW"))
        if b is not None:
            y = y + b.reshape(1, -1, 1, 1)
        return y

    ident = bn_train(conv(x_nchw, params["w_avg_pt"]), params["bn_avg_g"], params["bn_avg_b"])
    h = jax.nn.relu(bn_train(x_nchw, params["bn0_g"], params["bn0_b"]))
    h = conv(h, params["w1_pt"], params["b1"], pad=1)
    h = jax.nn.relu(bn_train(h, params["bn1_g"], params["bn1_b"]))
    h = conv(h, params["w2_pt"], params["b2"], pad=1)
    out = h + ident
    n, c, hh, ww = out.shape
    pooled = jnp.max(out.reshape(n, c, hh // 2, 2, ww // 2, 2), axis=(3, 5))
    return pooled, out


if __name__ == "__main__":
    N, Cin, Cout, H, W = 2, 4, 8, 16, 16
    ks = jax.random.split(jax.random.PRNGKey(0), 12)
    params = {
        "w_avg_pt": 0.3 * jax.random.normal(ks[0], (Cout, Cin, 1, 1), jnp.float32),
        "bn_avg_g": 1.0 + 0.1 * jax.random.normal(ks[1], (Cout,), jnp.float32),
        "bn_avg_b": 0.1 * jax.random.normal(ks[2], (Cout,), jnp.float32),
        "bn0_g":    1.0 + 0.1 * jax.random.normal(ks[3], (Cin,), jnp.float32),
        "bn0_b":    0.1 * jax.random.normal(ks[4], (Cin,), jnp.float32),
        "w1_pt":    0.2 * jax.random.normal(ks[5], (Cout, Cin, 3, 3), jnp.float32),
        "b1":       0.1 * jax.random.normal(ks[6], (Cout,), jnp.float32),
        "bn1_g":    1.0 + 0.1 * jax.random.normal(ks[7], (Cout,), jnp.float32),
        "bn1_b":    0.1 * jax.random.normal(ks[8], (Cout,), jnp.float32),
        "w2_pt":    0.2 * jax.random.normal(ks[9], (Cout, Cout, 3, 3), jnp.float32),
        "b2":       0.1 * jax.random.normal(ks[10], (Cout,), jnp.float32),
    }
    x = jax.random.normal(ks[11], (N, Cin, H, W), jnp.float32)

    down, full = pre_activate_res_block(x, params)
    jax.block_until_ready((down, full))

    down_ref, full_ref = _reference(x, params)
    assert full.shape == (N, Cout, H, W) and down.shape == (N, Cout, H // 2, W // 2)
    # bf16 kernel I/O + bf16 matmul operands (f32 accumulation) -> loose tolerance
    assert jnp.allclose(full, full_ref, atol=5e-2, rtol=5e-2), \
        float(jnp.max(jnp.abs(full - full_ref)))
    assert jnp.allclose(down, down_ref, atol=5e-2, rtol=5e-2), \
        float(jnp.max(jnp.abs(down - down_ref)))
    print("KERNEL_OK")
</pallas_src>

<mosaic_0001>
module attributes {stable_mosaic.version = 11 : i64} {
  func.func @kernel(%arg0: memref<32x64xbf16, #tpu.memory_space<vmem>>, %arg1: memref<64x128xbf16, #tpu.memory_space<vmem>>, %arg2: memref<64x64xf32, #tpu.memory_space<vmem>>, %arg3: memref<128x128xf32, #tpu.memory_space<vmem>>, %arg4: memref<1x128xf32, #tpu.memory_space<vmem>>, %arg5: memref<1x128xf32, #tpu.memory_space<vmem>>, %arg6: memref<1x64xf32, #tpu.memory_space<vmem>>, %arg7: memref<1x64xf32, #tpu.memory_space<vmem>>, %arg8: memref<3x64x128xbf16, #tpu.memory_space<vmem>>, %arg9: memref<1x128xf32, #tpu.memory_space<vmem>>, %arg10: memref<1x128xf32, #tpu.memory_space<vmem>>, %arg11: memref<1x128xf32, #tpu.memory_space<vmem>>, %arg12: memref<3x128x128xbf16, #tpu.memory_space<vmem>>, %arg13: memref<1x128xf32, #tpu.memory_space<vmem>>, %arg14: memref<2x128x64xf32, #tpu.memory_space<vmem>>, %arg15: memref<32x128xbf16, #tpu.memory_space<vmem>>, %arg16: memref<16x64xbf16, #tpu.memory_space<vmem>>) attributes {dimension_semantics = [], scalar_prefetch = 0 : i64, scratch_operands = 0 : i64, tpu.core_type = #tpu.core_type<tc>} {
    %c0 = arith.constant 0 : index
    %c0_0 = arith.constant 0 : index
    %0 = vector.load %arg0[%c0, %c0_0] : memref<32x64xbf16, #tpu.memory_space<vmem>>, vector<32x64xbf16>
    %1 = arith.extf %0 : vector<32x64xbf16> to vector<32x64xf32>
    %c0_1 = arith.constant 0 : index
    %c0_2 = arith.constant 0 : index
    %2 = vector.load %arg1[%c0_1, %c0_2] : memref<64x128xbf16, #tpu.memory_space<vmem>>, vector<64x128xbf16>
    %cst = arith.constant dense<0.000000e+00> : vector<32x128xf32>
    %3 = tpu.matmul %0, %2, %cst {dimension_numbers = #tpu.dot_dimension_numbers<[1], [0], [0], [1], [0, 0, 1, 1], [], []>} : vector<32x64xbf16>, vector<64x128xbf16>, vector<32x128xf32> -> vector<32x128xf32>
    %c0_3 = arith.constant 0 : index
    %c0_4 = arith.constant 0 : index
    %4 = vector.load %arg4[%c0_3, %c0_4] : memref<1x128xf32, #tpu.memory_space<vmem>>, vector<1x128xf32>
    %c0_5 = arith.constant 0 : index
    %c0_6 = arith.constant 0 : index
    %5 = vector.load %arg5[%c0_5, %c0_6] : memref<1x128xf32, #tpu.memory_space<vmem>>, vector<1x128xf32>
    %cst_7 = arith.constant dense<0.000000e+00> : vector<128xf32>
    %6 = vector.multi_reduction <add>, %3, %cst_7 [0] : vector<32x128xf32> to vector<128xf32>
    %7 = vector.shape_cast %6 : vector<128xf32> to vector<1x128xf32>
    %c0_8 = arith.constant 0 : index
    %c0_9 = arith.constant 0 : index
    %8 = vector.load %arg3[%c0_8, %c0_9] : memref<128x128xf32, #tpu.memory_space<vmem>>, vector<128x128xf32>
    %cst_10 = arith.constant dense<0.000000e+00> : vector<1x128xf32>
    %9 = tpu.matmul %7, %8, %cst_10 {dimension_numbers = #tpu.dot_dimension_numbers<[1], [0], [0], [1], [0, 0, 1, 1], [], []>} : vector<1x128xf32>, vector<128x128xf32>, vector<1x128xf32> -> vector<1x128xf32>
    %10 = vector.broadcast %9 : vector<1x128xf32> to vector<32x128xf32>
    %11 = arith.subf %3, %10 : vector<32x128xf32>
    %12 = arith.mulf %11, %11 : vector<32x128xf32>
    %cst_11 = arith.constant dense<0.000000e+00> : vector<128xf32>
    %13 = vector.multi_reduction <add>, %12, %cst_11 [0] : vector<32x128xf32> to vector<128xf32>
    %14 = vector.shape_cast %13 : vector<128xf32> to vector<1x128xf32>
    %c0_12 = arith.constant 0 : index
    %c0_13 = arith.constant 0 : index
    %15 = vector.load %arg3[%c0_12, %c0_13] : memref<128x128xf32, #tpu.memory_space<vmem>>, vector<128x128xf32>
    %cst_14 = arith.constant dense<0.000000e+00> : vector<1x128xf32>
    %16 = tpu.matmul %14, %15, %cst_14 {dimension_numbers = #tpu.dot_dimension_numbers<[1], [0], [0], [1], [0, 0, 1, 1], [], []>} : vector<1x128xf32>, vector<128x128xf32>, vector<1x128xf32> -> vector<1x128xf32>
    %cst_15 = arith.constant 9.99999974E-6 : f32
    %17 = vector.broadcast %cst_15 : f32 to vector<1x128xf32>
    %18 = arith.addf %16, %17 : vector<1x128xf32>
    %19 = math.rsqrt %18 : vector<1x128xf32>
    %20 = arith.mulf %4, %19 : vector<1x128xf32>
    %21 = vector.broadcast %20 : vector<1x128xf32> to vector<32x128xf32>
    %22 = arith.mulf %11, %21 : vector<32x128xf32>
    %23 = vector.broadcast %5 : vector<1x128xf32> to vector<32x128xf32>
    %24 = arith.addf %22, %23 : vector<32x128xf32>
    %c0_16 = arith.constant 0 : index
    %c0_17 = arith.constant 0 : index
    %25 = vector.load %arg6[%c0_16, %c0_17] : memref<1x64xf32, #tpu.memory_space<vmem>>, vector<1x64xf32>
    %c0_18 = arith.constant 0 : index
    %c0_19 = arith.constant 0 : index
    %26 = vector.load %arg7[%c0_18, %c0_19] : memref<1x64xf32, #tpu.memory_space<vmem>>, vector<1x64xf32>
    %cst_20 = arith.constant dense<0.000000e+00> : vector<64xf32>
    %27 = vector.multi_reduction <add>, %1, %cst_20 [0] : vector<32x64xf32> to vector<64xf32>
    %28 = vector.shape_cast %27 : vector<64xf32> to vector<1x64xf32>
    %c0_21 = arith.constant 0 : index
    %c0_22 = arith.constant 0 : index
    %29 = vector.load %arg2[%c0_21, %c0_22] : memref<64x64xf32, #tpu.memory_space<vmem>>, vector<64x64xf32>
    %cst_23 = arith.constant dense<0.000000e+00> : vector<1x64xf32>
    %30 = tpu.matmul %28, %29, %cst_23 {dimension_numbers = #tpu.dot_dimension_numbers<[1], [0], [0], [1], [0, 0, 1, 1], [], []>} : vector<1x64xf32>, vector<64x64xf32>, vector<1x64xf32> -> vector<1x64xf32>
    %31 = vector.broadcast %30 : vector<1x64xf32> to vector<32x64xf32>
    %32 = arith.subf %1, %31 : vector<32x64xf32>
    %33 = arith.mulf %32, %32 : vector<32x64xf32>
    %cst_24 = arith.constant dense<0.000000e+00> : vector<64xf32>
    %34 = vector.multi_reduction <add>, %33, %cst_24 [0] : vector<32x64xf32> to vector<64xf32>
    %35 = vector.shape_cast %34 : vector<64xf32> to vector<1x64xf32>
    %c0_25 = arith.constant 0 : index
    %c0_26 = arith.constant 0 : index
    %36 = vector.load %arg2[%c0_25, %c0_26] : memref<64x64xf32, #tpu.memory_space<vmem>>, vector<64x64xf32>
    %cst_27 = arith.constant dense<0.000000e+00> : vector<1x64xf32>
    %37 = tpu.matmul %35, %36, %cst_27 {dimension_numbers = #tpu.dot_dimension_numbers<[1], [0], [0], [1], [0, 0, 1, 1], [], []>} : vector<1x64xf32>, vector<64x64xf32>, vector<1x64xf32> -> vector<1x64xf32>
    %cst_28 = arith.constant 9.99999974E-6 : f32
    %38 = vector.broadcast %cst_28 : f32 to vector<1x64xf32>
    %39 = arith.addf %37, %38 : vector<1x64xf32>
    %40 = math.rsqrt %39 : vector<1x64xf32>
    %41 = arith.mulf %25, %40 : vector<1x64xf32>
    %42 = vector.broadcast %41 : vector<1x64xf32> to vector<32x64xf32>
    %43 = arith.mulf %32, %42 : vector<32x64xf32>
    %44 = vector.broadcast %26 : vector<1x64xf32> to vector<32x64xf32>
    %45 = arith.addf %43, %44 : vector<32x64xf32>
    %cst_29 = arith.constant 0.000000e+00 : f32
    %46 = vector.broadcast %cst_29 : f32 to vector<32x64xf32>
    %47 = arith.maximumf %45, %46 : vector<32x64xf32>
    %c0_30 = arith.constant 0 : index
    %c0_31 = arith.constant 0 : index
    %48 = vector.load %arg9[%c0_30, %c0_31] : memref<1x128xf32, #tpu.memory_space<vmem>>, vector<1x128xf32>
    %49 = arith.truncf %47 : vector<32x64xf32> to vector<32x64xbf16>
    %50 = vector.shape_cast %49 : vector<32x64xbf16> to vector<2x16x64xbf16>
    %cst_32 = arith.constant 0.000000e+00 : bf16
    %51 = vector.broadcast %cst_32 : bf16 to vector<2x1x64xbf16>
    %52 = vector.extract_strided_slice %50 {offsets = [0, 0, 0], sizes = [2, 15, 64], strides = [1, 1, 1]} : vector<2x16x64xbf16> to vector<2x15x64xbf16>
    %53 = tpu.concatenate %51, %52 in 1 : vector<2x1x64xbf16>, vector<2x15x64xbf16> -> vector<2x16x64xbf16>
    %54 = vector.shape_cast %53 : vector<2x16x64xbf16> to vector<32x64xbf16>
    %55 = vector.extract_strided_slice %50 {offsets = [0, 1, 0], sizes = [2, 15, 64], strides = [1, 1, 1]} : vector<2x16x64xbf16> to vector<2x15x64xbf16>
    %56 = tpu.concatenate %55, %51 in 1 : vector<2x15x64xbf16>, vector<2x1x64xbf16> -> vector<2x16x64xbf16>
    %57 = vector.shape_cast %56 : vector<2x16x64xbf16> to vector<32x64xbf16>
    %c0_33 = arith.constant 0 : index
    %c0_34 = arith.constant 0 : index
    %c0_35 = arith.constant 0 : index
    %58 = vector.load %arg8[%c0_33, %c0_34, %c0_35] : memref<3x64x128xbf16, #tpu.memory_space<vmem>>, vector<1x64x128xbf16>
    %59 = vector.shape_cast %58 : vector<1x64x128xbf16> to vector<64x128xbf16>
    %cst_36 = arith.constant dense<0.000000e+00> : vector<32x128xf32>
    %60 = tpu.matmul %54, %59, %cst_36 {dimension_numbers = #tpu.dot_dimension_numbers<[1], [0], [0], [1], [0, 0, 1, 1], [], []>} : vector<32x64xbf16>, vector<64x128xbf16>, vector<32x128xf32> -> vector<32x128xf32>
    %61 = vector.shape_cast %50 : vector<2x16x64xbf16> to vector<32x64xbf16>
    %c1 = arith.constant 1 : index
    %c0_37 = arith.constant 0 : index
    %c0_38 = arith.constant 0 : index
    %62 = vector.load %arg8[%c1, %c0_37, %c0_38] : memref<3x64x128xbf16, #tpu.memory_space<vmem>>, vector<1x64x128xbf16>
    %63 = vector.shape_cast %62 : vector<1x64x128xbf16> to vector<64x128xbf16>
    %cst_39 = arith.constant dense<0.000000e+00> : vector<32x128xf32>
    %64 = tpu.matmul %61, %63, %cst_39 {dimension_numbers = #tpu.dot_dimension_numbers<[1], [0], [0], [1], [0, 0, 1, 1], [], []>} : vector<32x64xbf16>, vector<64x128xbf16>, vector<32x128xf32> -> vector<32x128xf32>
    %65 = arith.addf %60, %64 : vector<32x128xf32>
    %c2 = arith.constant 2 : index
    %c0_40 = arith.constant 0 : index
    %c0_41 = arith.constant 0 : index
    %66 = vector.load %arg8[%c2, %c0_40, %c0_41] : memref<3x64x128xbf16, #tpu.memory_space<vmem>>, vector<1x64x128xbf16>
    %67 = vector.shape_cast %66 : vector<1x64x128xbf16> to vector<64x128xbf16>
    %cst_42 = arith.constant dense<0.000000e+00> : vector<32x128xf32>
    %68 = tpu.matmul %57, %67, %cst_42 {dimension_numbers = #tpu.dot_dimension_numbers<[1], [0], [0], [1], [0, 0, 1, 1], [], []>} : vector<32x64xbf16>, vector<64x128xbf16>, vector<32x128xf32> -> vector<32x128xf32>
    %69 = arith.addf %65, %68 : vector<32x128xf32>
    %70 = vector.broadcast %48 : vector<1x128xf32> to vector<32x128xf32>
    %71 = arith.addf %69, %70 : vector<32x128xf32>
    %c0_43 = arith.constant 0 : index
    %c0_44 = arith.constant 0 : index
    %72 = vector.load %arg10[%c0_43, %c0_44] : memref<1x128xf32, #tpu.memory_space<vmem>>, vector<1x128xf32>
    %c0_45 = arith.constant 0 : index
    %c0_46 = arith.constant 0 : index
    %73 = vector.load %arg11[%c0_45, %c0_46] : memref<1x128xf32, #tpu.memory_space<vmem>>, vector<1x128xf32>
    %cst_47 = arith.constant dense<0.000000e+00> : vector<128xf32>
    %74 = vector.multi_reduction <add>, %71, %cst_47 [0] : vector<32x128xf32> to vector<128xf32>
    %75 = vector.shape_cast %74 : vector<128xf32> to vector<1x128xf32>
    %c0_48 = arith.constant 0 : index
    %c0_49 = arith.constant 0 : index
    %76 = vector.load %arg3[%c0_48, %c0_49] : memref<128x128xf32, #tpu.memory_space<vmem>>, vector<128x128xf32>
    %cst_50 = arith.constant dense<0.000000e+00> : vector<1x128xf32>
    %77 = tpu.matmul %75, %76, %cst_50 {dimension_numbers = #tpu.dot_dimension_numbers<[1], [0], [0], [1], [0, 0, 1, 1], [], []>} : vector<1x128xf32>, vector<128x128xf32>, vector<1x128xf32> -> vector<1x128xf32>
    %78 = vector.broadcast %77 : vector<1x128xf32> to vector<32x128xf32>
    %79 = arith.subf %71, %78 : vector<32x128xf32>
    %80 = arith.mulf %79, %79 : vector<32x128xf32>
    %cst_51 = arith.constant dense<0.000000e+00> : vector<128xf32>
    %81 = vector.multi_reduction <add>, %80, %cst_51 [0] : vector<32x128xf32> to vector<128xf32>
    %82 = vector.shape_cast %81 : vector<128xf32> to vector<1x128xf32>
    %c0_52 = arith.constant 0 : index
    %c0_53 = arith.constant 0 : index
    %83 = vector.load %arg3[%c0_52, %c0_53] : memref<128x128xf32, #tpu.memory_space<vmem>>, vector<128x128xf32>
    %cst_54 = arith.constant dense<0.000000e+00> : vector<1x128xf32>
    %84 = tpu.matmul %82, %83, %cst_54 {dimension_numbers = #tpu.dot_dimension_numbers<[1], [0], [0], [1], [0, 0, 1, 1], [], []>} : vector<1x128xf32>, vector<128x128xf32>, vector<1x128xf32> -> vector<1x128xf32>
    %cst_55 = arith.constant 9.99999974E-6 : f32
    %85 = vector.broadcast %cst_55 : f32 to vector<1x128xf32>
    %86 = arith.addf %84, %85 : vector<1x128xf32>
    %87 = math.rsqrt %86 : vector<1x128xf32>
    %88 = arith.mulf %72, %87 : vector<1x128xf32>
    %89 = vector.broadcast %88 : vector<1x128xf32> to vector<32x128xf32>
    %90 = arith.mulf %79, %89 : vector<32x128xf32>
    %91 = vector.broadcast %73 : vector<1x128xf32> to vector<32x128xf32>
    %92 = arith.addf %90, %91 : vector<32x128xf32>
    %cst_56 = arith.constant 0.000000e+00 : f32
    %93 = vector.broadcast %cst_56 : f32 to vector<32x128xf32>
    %94 = arith.maximumf %92, %93 : vector<32x128xf32>
    %c0_57 = arith.constant 0 : index
    %c0_58 = arith.constant 0 : index
    %95 = vector.load %arg13[%c0_57, %c0_58] : memref<1x128xf32, #tpu.memory_space<vmem>>, vector<1x128xf32>
    %96 = arith.truncf %94 : vector<32x128xf32> to vector<32x128xbf16>
    %97 = vector.shape_cast %96 : vector<32x128xbf16> to vector<2x16x128xbf16>
    %cst_59 = arith.constant 0.000000e+00 : bf16
    %98 = vector.broadcast %cst_59 : bf16 to vector<2x1x128xbf16>
    %99 = vector.extract_strided_slice %97 {offsets = [0, 0, 0], sizes = [2, 15, 128], strides = [1, 1, 1]} : vector<2x16x128xbf16> to vector<2x15x128xbf16>
    %100 = tpu.concatenate %98, %99 in 1 : vector<2x1x128xbf16>, vector<2x15x128xbf16> -> vector<2x16x128xbf16>
    %101 = vector.shape_cast %100 : vector<2x16x128xbf16> to vector<32x128xbf16>
    %102 = vector.extract_strided_slice %97 {offsets = [0, 1, 0], sizes = [2, 15, 128], strides = [1, 1, 1]} : vector<2x16x128xbf16> to vector<2x15x128xbf16>
    %103 = tpu.concatenate %102, %98 in 1 : vector<2x15x128xbf16>, vector<2x1x128xbf16> -> vector<2x16x128xbf16>
    %104 = vector.shape_cast %103 : vector<2x16x128xbf16> to vector<32x128xbf16>
    %c0_60 = arith.constant 0 : index
    %c0_61 = arith.constant 0 : index
    %c0_62 = arith.constant 0 : index
    %105 = vector.load %arg12[%c0_60, %c0_61, %c0_62] : memref<3x128x128xbf16, #tpu.memory_space<vmem>>, vector<1x128x128xbf16>
    %106 = vector.shape_cast %105 : vector<1x128x128xbf16> to vector<128x128xbf16>
    %cst_63 = arith.constant dense<0.000000e+00> : vector<32x128xf32>
    %107 = tpu.matmul %101, %106, %cst_63 {dimension_numbers = #tpu.dot_dimension_numbers<[1], [0], [0], [1], [0, 0, 1, 1], [], []>} : vector<32x128xbf16>, vector<128x128xbf16>, vector<32x128xf32> -> vector<32x128xf32>
    %108 = vector.shape_cast %97 : vector<2x16x128xbf16> to vector<32x128xbf16>
    %c1_64 = arith.constant 1 : index
    %c0_65 = arith.constant 0 : index
    %c0_66 = arith.constant 0 : index
    %109 = vector.load %arg12[%c1_64, %c0_65, %c0_66] : memref<3x128x128xbf16, #tpu.memory_space<vmem>>, vector<1x128x128xbf16>
    %110 = vector.shape_cast %109 : vector<1x128x128xbf16> to vector<128x128xbf16>
    %cst_67 = arith.constant dense<0.000000e+00> : vector<32x128xf32>
    %111 = tpu.matmul %108, %110, %cst_67 {dimension_numbers = #tpu.dot_dimension_numbers<[1], [0], [0], [1], [0, 0, 1, 1], [], []>} : vector<32x128xbf16>, vector<128x128xbf16>, vector<32x128xf32> -> vector<32x128xf32>
    %112 = arith.addf %107, %111 : vector<32x128xf32>
    %c2_68 = arith.constant 2 : index
    %c0_69 = arith.constant 0 : index
    %c0_70 = arith.constant 0 : index
    %113 = vector.load %arg12[%c2_68, %c0_69, %c0_70] : memref<3x128x128xbf16, #tpu.memory_space<vmem>>, vector<1x128x128xbf16>
    %114 = vector.shape_cast %113 : vector<1x128x128xbf16> to vector<128x128xbf16>
    %cst_71 = arith.constant dense<0.000000e+00> : vector<32x128xf32>
    %115 = tpu.matmul %104, %114, %cst_71 {dimension_numbers = #tpu.dot_dimension_numbers<[1], [0], [0], [1], [0, 0, 1, 1], [], []>} : vector<32x128xbf16>, vector<128x128xbf16>, vector<32x128xf32> -> vector<32x128xf32>
    %116 = arith.addf %112, %115 : vector<32x128xf32>
    %117 = vector.broadcast %95 : vector<1x128xf32> to vector<32x128xf32>
    %118 = arith.addf %116, %117 : vector<32x128xf32>
    %119 = arith.addf %118, %24 : vector<32x128xf32>
    %120 = arith.truncf %119 : vector<32x128xf32> to vector<32x128xbf16>
    %c0_72 = arith.constant 0 : index
    %c0_73 = arith.constant 0 : index
    %121 = vector.load %arg15[%c0_72, %c0_73] : memref<32x128xbf16, #tpu.memory_space<vmem>>, vector<32x128xbf16>
    tpu.vector_store %arg15[%c0_72, %c0_73], %120 {strides = array<i32>} : memref<32x128xbf16, #tpu.memory_space<vmem>>, vector<32x128xbf16>,
    %122 = vector.shape_cast %119 : vector<32x128xf32> to vector<16x2x128xf32>
    %cst_74 = arith.constant dense<0xFF800000> : vector<16x128xf32>
    %123 = vector.multi_reduction <maximumf>, %122, %cst_74 [1] : vector<16x2x128xf32> to vector<16x128xf32>
    %c0_75 = arith.constant 0 : index
    %c0_76 = arith.constant 0 : index
    %c0_77 = arith.constant 0 : index
    %124 = vector.load %arg14[%c0_75, %c0_76, %c0_77] : memref<2x128x64xf32, #tpu.memory_space<vmem>>, vector<1x128x64xf32>
    %125 = vector.shape_cast %124 : vector<1x128x64xf32> to vector<128x64xf32>
    %cst_78 = arith.constant dense<0.000000e+00> : vector<16x64xf32>
    %126 = tpu.matmul %123, %125, %cst_78 {dimension_numbers = #tpu.dot_dimension_numbers<[1], [0], [0], [1], [0, 0, 1, 1], [], []>} : vector<16x128xf32>, vector<128x64xf32>, vector<16x64xf32> -> vector<16x64xf32>
    %c1_79 = arith.constant 1 : index
    %c0_80 = arith.constant 0 : index
    %c0_81 = arith.constant 0 : index
    %127 = vector.load %arg14[%c1_79, %c0_80, %c0_81] : memref<2x128x64xf32, #tpu.memory_space<vmem>>, vector<1x128x64xf32>
    %128 = vector.shape_cast %127 : vector<1x128x64xf32> to vector<128x64xf32>
    %cst_82 = arith.constant dense<0.000000e+00> : vector<16x64xf32>
    %129 = tpu.matmul %123, %128, %cst_82 {dimension_numbers = #tpu.dot_dimension_numbers<[1], [0], [0], [1], [0, 0, 1, 1], [], []>} : vector<16x128xf32>, vector<128x64xf32>, vector<16x64xf32> -> vector<16x64xf32>
    %130 = arith.maximumf %126, %129 : vector<16x64xf32>
    %131 = arith.truncf %130 : vector<16x64xf32> to vector<16x64xbf16>
    %c0_83 = arith.constant 0 : index
    %c0_84 = arith.constant 0 : index
    %132 = vector.load %arg16[%c0_83, %c0_84] : memref<16x64xbf16, #tpu.memory_space<vmem>>, vector<16x64xbf16>
    tpu.vector_store %arg16[%c0_83, %c0_84], %131 {strides = array<i32>} : memref<16x64xbf16, #tpu.memory_space<vmem>>, vector<16x64xbf16>,
    return
  }
}

</mosaic_0001>

<bundles_post_ra>
// kernel: tpu_custom_call.1
= control target key start
LH: loop header
LB: loop body
LE: loop exit
PB: predicated region body
PF: predicated region fallthrough
CT: control target
= control target key end

     0   :  { %s3816_s0 = inlined_call_operand.hbm [shape: bf16[32,64], index: 0, kind: input, shape index: {}]   ;;  %s3817_s1 = inlined_call_operand.hbm [shape: bf16[64,128], index: 1, kind: input, shape index: {}]   ;;  %s3818_s2 = inlined_call_operand.vmem [shape: f32[64,64], index: 2, kind: input, shape index: {}]   ;;  %s3819_s3 = inlined_call_operand.vmem [shape: f32[128,128], index: 3, kind: input, shape index: {}]   ;;  %s3820_s4 = inlined_call_operand.vmem [shape: f32[1,128], index: 4, kind: input, shape index: {}]   ;;  %s3821_s5 = inlined_call_operand.vmem [shape: f32[1,128], index: 5, kind: input, shape index: {}]   ;;  %s3822_s6 = inlined_call_operand.vmem [shape: f32[1,64], index: 6, kind: input, shape index: {}]   ;;  %s3823_s7 = inlined_call_operand.vmem [shape: f32[1,64], index: 7, kind: input, shape index: {}]   ;;  %s3824_s8 = inlined_call_operand.hbm [shape: bf16[3,64,128], index: 8, kind: input, shape index: {}]   ;;  %s3825_s9 = inlined_call_operand.vmem [shape: f32[1,128], index: 9, kind: input, shape index: {}]   ;;  %s3826_s10 = inlined_call_operand.vmem [shape: f32[1,128], index: 10, kind: input, shape index: {}]   ;;  %s3827_s11 = inlined_call_operand.vmem [shape: f32[1,128], index: 11, kind: input, shape index: {}]   ;;  %s3828_s12 = inlined_call_operand.vmem [shape: bf16[3,128,128], index: 12, kind: input, shape index: {}]   ;;  %s3829_s13 = inlined_call_operand.vmem [shape: f32[1,128], index: 13, kind: input, shape index: {}]   ;;  %s3830_s14 = inlined_call_operand.vmem [shape: f32[2,128,64], index: 14, kind: input, shape index: {}]   ;;  %s3831_s15 = inlined_call_operand.hbm [shape: bf16[32,128], index: 15, kind: output, shape index: {0}]   ;;  %s3832_s16 = inlined_call_operand.hbm [shape: bf16[16,64], index: 16, kind: output, shape index: {1}]  }
   0x1   :  { %3834 = sst [smem:[#allocation15_spill]] %s3816_s0 }
   0x2   :  { %22 = vsyncpa [#allocation3], 0 }
   0x3   :  { %23 = vsyncpa [#allocation6], 0 }
   0x4   :  { %24 = vsyncpa [#allocation4], 0 }
   0x5   :  { %25 = vsyncpa [#allocation10], 0  ;;  %s3057_s21 = smov [#allocation5]   ;;  %s3058_s23 = smov [#allocation2]  }
   0x6   :  { %s43_s22 = sshll.u32 %s3057_s21, 4  ;;  %s31_s24 = sshll.u32 %s3058_s23, 4  ;;  %s44_s22 = int_to_ptr.vmem [resolvable:$true] %s43_s22  ;;  %s3153_s24 = int_to_ptr.vmem [resolvable:$true] %s31_s24 }
   0x7   :  { %s2939_s27 = scalar_lea.hbm %s3817_s1, 512 }
   0x8   :  { %p2940_p0 = scmp.ne.s32.totalorder %s3817_s1, %s2939_s27  ;;  %p2943_p1 = scmp.lt.u32.totalorder %s2939_s27, %s3817_s1 }
   0xa   :  { %p2945_p2 = pnand %p2943_p1, %p2940_p0 }
   0xc   :  { %2948 = shalt.err (!%p2945_p2)
}
   0xd   :  { %s2949_s17 = scalar_lea.vmem %s44_s22, 512  ;;  %p2954_p4 = scmp.lt.s32.totalorder %s44_s22, %s44_s22 }
   0xe   :  { %p2950_p3 = scmp.ne.s32.totalorder %s44_s22, %s2949_s17  ;;  %p2955_p5 = scmp.lt.s32.totalorder %s2949_s17, %s2949_s17 }
  0x10   :  { %p2956_p6 = por %p2955_p5, %p2954_p4 }
  0x12   :  { %p2957_p7 = pnand %p2956_p6, %p2950_p3 }
  0x14   :  { %2960 = shalt.err (!%p2957_p7)
}
  0x15   :  { %s3059_s18 = smov 64   ;;  %s3060_s19 = smov 4  }
  0x16   :  { %49 = dma.hbm_to_vmem [thread:$0]  %s3817_s1, 512, %s44_s22, [#allocation6], %s3059_s18, %s3059_s18, %s3060_s19  }
  0x17   :  { %s3835_s26 = sld [smem:[#allocation15_spill]] }
  0x1d   :  { %s2961_s27 = scalar_lea.hbm %s3835_s26, 256 }
  0x1e   :  { %p2962_p8 = scmp.ne.s32.totalorder %s3835_s26, %s2961_s27  ;;  %p2965_p9 = scmp.lt.u32.totalorder %s2961_s27, %s3835_s26 }
  0x20   :  { %p2967_p10 = pnand %p2965_p9, %p2962_p8 }
  0x22   :  { %2970 = shalt.err (!%p2967_p10)
}
  0x23   :  { %s2971_s17 = scalar_lea.vmem %s3153_s24, 256  ;;  %p2976_p12 = scmp.lt.s32.totalorder %s3153_s24, %s3153_s24 }
  0x24   :  { %p2972_p11 = scmp.ne.s32.totalorder %s3153_s24, %s2971_s17  ;;  %p2977_p13 = scmp.lt.s32.totalorder %s2971_s17, %s2971_s17 }
  0x26   :  { %p2978_p0 = por %p2977_p13, %p2976_p12 }
  0x28   :  { %p2979_p1 = pnand %p2978_p0, %p2972_p11 }
  0x2a   :  { %2982 = shalt.err (!%p2979_p1)
}
  0x2b   :  { %37 = dma.hbm_to_vmem [thread:$0]  %s3835_s26, 256, %s3153_s24, [#allocation3], %s3059_s18, %s3059_s18, %s3060_s19  }
  0x2c   :  { %s3061_s20 = smov [#allocation7]   ;;  %s2983_s27 = scalar_lea.hbm %s3824_s8, 1536 }
  0x2d   :  { %s67_s21 = sshll.u32 %s3061_s20, 4  ;;  %p2984_p2 = scmp.ne.s32.totalorder %s3824_s8, %s2983_s27  ;;  %s68_s21 = int_to_ptr.vmem [resolvable:$true] %s67_s21 }
  0x2e   :  { %p2987_p3 = scmp.lt.u32.totalorder %s2983_s27, %s3824_s8 }
  0x30   :  { %p2989_p4 = pnand %p2987_p3, %p2984_p2 }
  0x32   :  { %2992 = shalt.err (!%p2989_p4)
}
  0x33   :  { %s2993_s17 = scalar_lea.vmem %s68_s21, 1536  ;;  %p2998_p6 = scmp.lt.s32.totalorder %s68_s21, %s68_s21 }
  0x34   :  { %p2994_p5 = scmp.ne.s32.totalorder %s68_s21, %s2993_s17  ;;  %p2999_p7 = scmp.lt.s32.totalorder %s2993_s17, %s2993_s17 }
  0x36   :  { %p3000_p8 = por %p2999_p7, %p2998_p6 }
  0x38   :  { %p3001_p9 = pnand %p3000_p8, %p2994_p5 }
  0x3a   :  { %3004 = shalt.err (!%p3001_p9)
}
  0x3b   :  { %73 = dma.hbm_to_vmem [thread:$0]  %s3824_s8, 1536, %s68_s21, [#allocation6], %s3059_s18, %s3059_s18, %s3060_s19  }
  0x3c   :  { %3049 = dma.done.wait [#allocation3], 256  }
  0x3d   :  { %3050 = vsyncadd [#allocation3], 4294967040 }
  0x3e   :  { %3051 = dma.done.wait [#allocation6], 2048  }
  0x3f   :  { %3052 = vsyncadd [#allocation6], 4294965248  ;;  %v3062_v0 = vmov 0.0|0.0   ;;  %v2889_v1 = vld [vmem:[#allocation5] sm:$0xff]   ;;  %v2890_v2 = vld [vmem:[#allocation5 + $0x8] sm:$0xff]   ;;  %vm146_vm0 = vcmask 523264  }
  0x40   :  { %2678 = vmatprep.subr.bf16.mxu1 %v3062_v0  ;;  %2322 = vmatprep.subr.bf16.mxu0 %v2889_v1  ;;  %v2891_v3 = vld [vmem:[#allocation5 + $0x10] sm:$0xff]   ;;  %v214_v6 = vld [vmem:[%s3819_s3 + $0x8] sm:$0xff]  ;;  %v215_v7 = vld [vmem:[%s3819_s3 + $0x10] sm:$0xff]  ;;  %vm3063_vm1 = vmmov 0   ;;  %v3064_v30 = vmov 0.0   ;;  %vm651_vm2 = vcmask 1040384  }
  0x41   :  { %2323 = vmatpush3.bf16.msra.mxu0 %v2889_v1  ;;  %v3206_v4 = vld [vmem:[#allocation2] sm:$0xff]   ;;  %v216_v8 = vld [vmem:[%s3819_s3 + $0x18] sm:$0xff]  ;;  %v2892_v10 = vld [vmem:[#allocation5 + $0x18] sm:$0xff]   ;;  %2366 = vmatprep.mubr.msk.f32.mxu1 %vm3063_vm1, %v3064_v30  ;;  %vm652_vm3 = vsmask.f32 256  ;;  %vm662_vm5 = vcmask 1047552  }
  0x42   :  { %2324 = vmatprep.subr.bf16.mxu0 %v2890_v2  ;;  %v213_v5 = vld [vmem:[%s3819_s3] sm:$0xff]  ;;  %2330 = vmatprep.mubr.msk.bf16.mxu0 %vm146_vm0, %v3206_v4  ;;  %v3228_v12 = vpack.c.bf16 %v216_v8, %v215_v7  ;;  %v218_v13 = vld [vmem:[%s3819_s3 + $0x28] sm:$0xff]  ;;  %v219_v16 = vld [vmem:[%s3819_s3 + $0x30] sm:$0xff]  ;;  %v100_v32 = vunpack.c.l.bf16 %v3206_v4  ;;  %v101_v33 = vunpack.c.h.bf16 %v3206_v4  ;;  %vm663_vm6 = vsmask.f32 7424 }
  0x43   :  { %v3220_v9 = vpack.c.bf16 %v214_v6, %v213_v5  ;;  %v217_v11 = vld [vmem:[%s3819_s3 + $0x20] sm:$0xff]  ;;  %v3233_v14 = vld [vmem:[#allocation2 + $0x8] sm:$0xff]   ;;  %v220_v17 = vld [vmem:[%s3819_s3 + $0x38] sm:$0xff]  ;;  %vm1636_vm8 = vcmask 1041408   ;;  %vm1781_vm9 = vcmask 1041409   ;;  %vm1783_vm10 = vcmask 1042434  }
  0x44   :  { %v3237_v15 = vpack.c.bf16 %v218_v13, %v217_v11  ;;  %v3257_v18 = vpack.c.bf16 %v220_v17, %v219_v16  ;;  %v221_v19 = vld [vmem:[%s3819_s3 + $0x40] sm:$0xff]  ;;  %v222_v20 = vld [vmem:[%s3819_s3 + $0x48] sm:$0xff]  ;;  %v223_v22 = vld [vmem:[%s3819_s3 + $0x50] sm:$0xff]  ;;  %v102_v34 = vunpack.c.l.bf16 %v3233_v14  ;;  %v414_v35 = vsel %vm146_vm0, %v100_v32, 0.0 }
  0x45   :  { %2325 = vmatpush3.bf16.msra.mxu0 %v2890_v2  ;;  %2680 = vmatpush3.bf16.msra.mxu1 %v3220_v9  ;;  %v3269_v21 = vpack.c.bf16 %v222_v20, %v221_v19  ;;  %v224_v23 = vld [vmem:[%s3819_s3 + $0x58] sm:$0xff]  ;;  %v225_v25 = vld [vmem:[%s3819_s3 + $0x60] sm:$0xff]  ;;  %v226_v26 = vld [vmem:[%s3819_s3 + $0x68] sm:$0xff]  ;;  %v415_v36 = vsel %vm146_vm0, %v101_v33, 0.0  ;;  %v103_v42 = vunpack.c.h.bf16 %v3233_v14  ;;  %v299_v16 = vlaneseq }
  0x46   :  { %2326 = vmatprep.subr.bf16.mxu0 %v2891_v3  ;;  %2681 = vmatprep.subr.bf16.mxu1 %v3062_v0  ;;  %v3281_v24 = vpack.c.bf16 %v224_v23, %v223_v22  ;;  %v3293_v27 = vpack.c.bf16 %v226_v26, %v225_v25  ;;  %v227_v28 = vld [vmem:[%s3819_s3 + $0x70] sm:$0xff]  ;;  %v228_v29 = vld [vmem:[%s3819_s3 + $0x78] sm:$0xff]  ;;  %v416_v39 = vadd.f32 %v415_v36, %v414_v35  ;;  %v417_v41 = vsel %vm146_vm0, %v102_v34, 0.0  ;;  %v427_v55 = vld [vmem:[%s3818_s2] sm:$0xff] }
  0x47   :  { %v3306_v31 = vpack.c.bf16 %v228_v29, %v227_v28  ;;  %v419_v47 = vsel %vm146_vm0, %v103_v42, 0.0  ;;  %v428_v56 = vld [vmem:[%s3818_s2 + $0x8] sm:$0xff]  ;;  %v429_v61 = vld [vmem:[%s3818_s2 + $0x10] sm:$0xff]  ;;  %v430_v62 = vld [vmem:[%s3818_s2 + $0x18] sm:$0xff]  ;;  %v3367_v17 = vshrl.u32 %v299_v16, 7  ;;  %vm1785_vm11 = vcmask 1043459  }
  0x48   :  { %v418_v45 = vadd.f32 %v417_v41, %v416_v39  ;;  %v3337_v59 = vpack.c.bf16 %v428_v56, %v427_v55  ;;  %v3346_v1 = vpack.c.bf16 %v430_v62, %v429_v61  ;;  %v431_v2 = vld [vmem:[%s3818_s2 + $0x20] sm:$0xff]  ;;  %v433_v7 = vld [vmem:[%s3818_s2 + $0x30] sm:$0xff]  ;;  %v434_v8 = vld [vmem:[%s3818_s2 + $0x38] sm:$0xff]  ;;  %vm1787_vm12 = vcmask 1044484  }
  0x49   :  { %2327 = vmatpush3.bf16.msra.mxu0 %v2891_v3  ;;  %2683 = vmatpush3.bf16.msra.mxu1 %v3228_v12  ;;  %v432_v3 = vld [vmem:[%s3818_s2 + $0x28] sm:$0xff]  ;;  %v2736_v11 = vpack.c.bf16 %v434_v8, %v433_v7  ;;  %v3370_v19 = vsub.s32 0, %v3367_v17  ;;  %v2897_v7 = vld [vmem:[#allocation7 + $0x30] sm:$0xff]   ;;  %vm3460_vm4 = vmand %vm651_vm2, %vm652_vm3  ;;  %vm1789_vm13 = vcmask 1045509   ;;  %vm1791_vm14 = vcmask 1046534  }
  0x4a   :  { %2328 = vmatprep.subr.bf16.mxu0 %v2892_v10  ;;  %2684 = vmatprep.subr.bf16.mxu1 %v3062_v0  ;;  %v420_v49 = vadd.f32 %v419_v47, %v418_v45  ;;  %v2733_v6 = vpack.c.bf16 %v432_v3, %v431_v2  ;;  %v2898_v8 = vld [vmem:[#allocation7 + $0x38] sm:$0xff]   ;;  %vm3467_vm7 = vmand %vm662_vm5, %vm663_vm6  ;;  %vm1793_vm15 = vcmask 1047559  }
  0x4c   :  { %v421_v52 = vrot.slane %v420_v49, 4 }
  0x4d   :  { %2329 = vmatpush3.bf16.msra.mxu0 %v2892_v10  ;;  %2686 = vmatpush3.bf16.msra.mxu1 %v3237_v15 }
  0x4e   :  { %2702 = vmatprep.subr.bf16.mxu0 %v3062_v0  ;;  %2687 = vmatprep.subr.bf16.mxu1 %v3062_v0  ;;  %v422_v57 = vadd.f32 %v421_v52, %v420_v49 }
  0x50   :  { %2331 = vmatmul.mubr.msk.bf16.vlgmr.msra.gmra.mrb[0].mxu0 %vm146_vm0, %v3233_v14  ;;  %v423_v63 = vrot.slane %v422_v57, 2 }
  0x51   :  { %2704 = vmatpush3.bf16.msra.mxu0 %v3220_v9  ;;  %2689 = vmatpush3.bf16.msra.mxu1 %v3257_v18 }
  0x52   :  { %2705 = vmatprep.subr.bf16.mxu0 %v3062_v0  ;;  %2690 = vmatprep.subr.bf16.mxu1 %v3062_v0  ;;  %v424_v5 = vadd.f32 %v423_v63, %v422_v57 }
  0x53   :  { %2401 = vmatprep.mubr.msk.f32.mxu0 %vm3063_vm1, %v3064_v30 }
  0x54   :  { %v425_v10 = vrot.slane %v424_v5, 1 }
  0x55   :  { %2707 = vmatpush3.bf16.msra.mxu0 %v3228_v12  ;;  %2692 = vmatpush3.bf16.msra.mxu1 %v3269_v21 }
  0x56   :  { %2708 = vmatprep.subr.bf16.mxu0 %v3062_v0  ;;  %2693 = vmatprep.subr.bf16.mxu1 %v3062_v0  ;;  %v426_v13 = vadd.f32 %v425_v10, %v424_v5  ;;  %v2899_v10 = vld [vmem:[#allocation7] sm:$0xff]  }
  0x59   :  { %2710 = vmatpush3.bf16.msra.mxu0 %v3237_v15  ;;  %2695 = vmatpush3.bf16.msra.mxu1 %v3281_v24 }
  0x5a   :  { %2711 = vmatprep.subr.bf16.mxu0 %v3062_v0  ;;  %2696 = vmatprep.subr.bf16.mxu1 %v3062_v0 }
  0x5d   :  { %2713 = vmatpush3.bf16.msra.mxu0 %v3257_v18  ;;  %2698 = vmatpush3.bf16.msra.mxu1 %v3293_v27 }
  0x5e   :  { %2714 = vmatprep.subr.bf16.mxu0 %v3062_v0  ;;  %2699 = vmatprep.subr.bf16.mxu1 %v3062_v0 }
  0x61   :  { %2716 = vmatpush3.bf16.msra.mxu0 %v3269_v21  ;;  %2701 = vmatpush3.bf16.msra.mxu1 %v3306_v31 }
  0x62   :  { %2717 = vmatprep.subr.bf16.mxu0 %v3062_v0  ;;  %2726 = vmatprep.subr.bf16.mxu1 %v3062_v0 }
  0x65   :  { %2719 = vmatpush3.bf16.msra.mxu0 %v3281_v24 }
  0x66   :  { %2720 = vmatprep.subr.bf16.mxu0 %v3062_v0 }
  0x69   :  { %2722 = vmatpush3.bf16.msra.mxu0 %v3293_v27 }
  0x6a   :  { %2723 = vmatprep.subr.bf16.mxu0 %v3062_v0 }
  0x6d   :  { %2725 = vmatpush3.bf16.msra.mxu0 %v3306_v31 }
  0x6e   :  { %2738 = vmatprep.subr.bf16.mxu0 %v3062_v0 }
 0x123   :  { %v2332_v37 = vpop.f32.mrb[0].mxu0 }
 0x124   :  { %v187_v38 = vpop.f32.mrb[1].mxu0 }
 0x125   :  { %v2333_v40 = vpop.f32.mrb[2].mxu0 }
 0x126   :  { %v190_v43 = vpop.f32.mrb[3].mxu0 }
 0x127   :  { %v204_v44 = vadd.f32 %v190_v43, %v187_v38 }
 0x129   :  { %v205_v46 = vadd.f32 %v2332_v37, %v204_v44 }
 0x12b   :  { %v206_v48 = vadd.f32 %v2333_v40, %v205_v46 }
 0x12d   :  { %v207_v50 = vrot.slane %v206_v48, 4 }
 0x12f   :  { %v208_v51 = vadd.f32 %v207_v50, %v206_v48 }
 0x131   :  { %v209_v53 = vrot.slane %v208_v51, 2 }
 0x133   :  { %v210_v54 = vadd.f32 %v209_v53, %v208_v51 }
 0x135   :  { %v211_v58 = vrot.slane %v210_v54, 1 }
 0x137   :  { %v212_v60 = vadd.f32 %v211_v58, %v210_v54 }
 0x139   :  { %2367 = vmatmul.mubr.f32.vlgmr.msra.gmra.mrb[0].mxu1 %v212_v60 }
 0x13a   :  { %2728 = vmatpush3.bf16.msra.mxu1 %v3337_v59  ;;  %2420 = vmatprep.mubr.msk.f32.mxu1 %vm3063_vm1, %v3064_v30 }
 0x13b   :  { %2729 = vmatprep.subr.bf16.mxu1 %v3062_v0 }
 0x13e   :  { %2731 = vmatpush3.bf16.msra.mxu1 %v3346_v1 }
 0x13f   :  { %2732 = vmatprep.subr.bf16.mxu1 %v3062_v0 }
 0x142   :  { %2734 = vmatpush3.bf16.msra.mxu1 %v2733_v6 }
 0x143   :  { %2735 = vmatprep.subr.bf16.mxu1 %v3062_v0 }
 0x146   :  { %2737 = vmatpush3.bf16.msra.mxu1 %v2736_v11 }
 0x149   :  { %2421 = vmatmul.mubr.msk.f32.vlgmr.msra.gmra.mrb[2].mxu1 %vm146_vm0, %v426_v13 }
 0x20c   :  { %v295_v20 = vpop.f32.mrb[0].mxu1 }
 0x20d   :  { %v302_v22 = vrot.slane %v295_v20, %v3370_v19  ;;  %v2368_v23 = vpop.f32.mrb[1].mxu1 }
 0x20e   :  { %v412_v23 = vld [vmem:[%s3822_s6] sm:$0x1] }
 0x20f   :  { %v3373_v25 = vsub.f32 %v187_v38, %v302_v22  ;;  %v3375_v26 = vsub.f32 %v190_v43, %v302_v22  ;;  %v3377_v28 = vsub.f32 %v2332_v37, %v302_v22  ;;  %v3379_v29 = vsub.f32 %v2333_v40, %v302_v22 }
 0x211   :  { %v307_v35 = vmul.f32 %v3373_v25, %v3373_v25  ;;  %v308_v36 = vmul.f32 %v3375_v26, %v3375_v26  ;;  %v309_v39 = vmul.f32 %v3377_v28, %v3377_v28  ;;  %v310_v38 = vmul.f32 %v3379_v29, %v3379_v29 }
 0x213   :  { %v311_v41 = vadd.f32 %v308_v36, %v307_v35 }
 0x215   :  { %v312_v44 = vadd.f32 %v311_v41, %v309_v39  ;;  %v2029_v41 = vld [vmem:[%s3823_s7] ss:$0 sm:$0xff] }
 0x217   :  { %v313_v43 = vadd.f32 %v312_v44, %v310_v38 }
 0x219   :  { %v314_v45 = vrot.slane %v313_v43, 4 }
 0x21b   :  { %v315_v37 = vadd.f32 %v314_v45, %v313_v43 }
 0x21c   :  { %v504_v46 = vpop.f32.mrb[2].mxu1 }
 0x21d   :  { %v511_v40 = vrot.slane %v504_v46, %v3370_v19  ;;  %v2422_v47 = vpop.f32.mrb[3].mxu1  ;;  %v316_v48 = vrot.slane %v315_v37, 2 }
 0x21f   :  { %v3392_v49 = vsub.f32 %v100_v32, %v511_v40  ;;  %v3396_v50 = vsub.f32 %v101_v33, %v511_v40  ;;  %v3400_v51 = vsub.f32 %v102_v34, %v511_v40  ;;  %v3404_v52 = vsub.f32 %v103_v42, %v511_v40 }
 0x220   :  { %v317_v53 = vadd.f32 %v316_v48, %v315_v37 }
 0x221   :  { %v516_v54 = vmul.f32 %v3392_v49, %v3392_v49  ;;  %v517_v32 = vmul.f32 %v3396_v50, %v3396_v50  ;;  %v518_v4 = vmul.f32 %v3400_v51, %v3400_v51  ;;  %v519_v55 = vmul.f32 %v3404_v52, %v3404_v52 }
 0x222   :  { %v318_v33 = vrot.slane %v317_v53, 1 }
 0x223   :  { %v520_v34 = vsel %vm146_vm0, %v516_v54, 0.0  ;;  %v521_v14 = vsel %vm146_vm0, %v517_v32, 0.0  ;;  %v523_v57 = vsel %vm146_vm0, %v518_v4, 0.0  ;;  %v525_v60 = vsel %vm146_vm0, %v519_v55, 0.0  ;;  %v2900_v55 = vld [vmem:[#allocation7 + $0x8] sm:$0xff]  }
 0x224   :  { %v522_v42 = vadd.f32 %v521_v14, %v520_v34  ;;  %v319_v56 = vadd.f32 %v318_v33, %v317_v53  ;;  %v2901_v34 = vld [vmem:[#allocation7 + $0x10] sm:$0xff]  }
 0x226   :  { %v524_v58 = vadd.f32 %v523_v57, %v522_v42  ;;  %2402 = vmatmul.mubr.f32.vlgmr.msra.gmra.mrb[4].mxu0 %v319_v56  ;;  %v2902_v57 = vld [vmem:[#allocation7 + $0x18] sm:$0xff]  }
 0x227   :  { %2740 = vmatpush3.bf16.msra.mxu0 %v3337_v59  ;;  %2439 = vmatprep.mubr.msk.f32.mxu0 %vm3063_vm1, %v3064_v30 }
 0x228   :  { %v526_v61 = vadd.f32 %v525_v60, %v524_v58  ;;  %2741 = vmatprep.subr.bf16.mxu0 %v3062_v0 }
 0x22a   :  { %v527_v62 = vrot.slane %v526_v61, 4 }
 0x22b   :  { %2743 = vmatpush3.bf16.msra.mxu0 %v3346_v1  ;;  %v2895_v1 = vld [vmem:[#allocation7 + $0x20] sm:$0xff]  }
 0x22c   :  { %v528_v63 = vadd.f32 %v527_v62, %v526_v61  ;;  %2744 = vmatprep.subr.bf16.mxu0 %v3062_v0  ;;  %2442 = vmatprep.subr.bf16.mxu1 %v2895_v1  ;;  %v2903_v62 = vld [vmem:[#allocation7 + $0x40] sm:$0xff]  }
 0x22d   :  { %2443 = vmatpush3.bf16.msra.mxu1 %v2895_v1 }
 0x22e   :  { %v529_v2 = vrot.slane %v528_v63, 2 }
 0x22f   :  { %2746 = vmatpush3.bf16.msra.mxu0 %v2733_v6  ;;  %v2896_v6 = vld [vmem:[#allocation7 + $0x28] sm:$0xff]  }
 0x230   :  { %2747 = vmatprep.subr.bf16.mxu0 %v3062_v0  ;;  %v530_v3 = vadd.f32 %v529_v2, %v528_v63  ;;  %2444 = vmatprep.subr.bf16.mxu1 %v2896_v6 }
 0x231   :  { %2445 = vmatpush3.bf16.msra.mxu1 %v2896_v6  ;;  %v2905_v6 = vld [vmem:[#allocation7 + $0x50] sm:$0xff]  }
 0x232   :  { %v531_v5 = vrot.slane %v530_v3, 1  ;;  %2446 = vmatprep.subr.bf16.mxu1 %v2897_v7 }
 0x233   :  { %2749 = vmatpush3.bf16.msra.mxu0 %v2736_v11 }
 0x234   :  { %v532_v59 = vadd.f32 %v531_v5, %v530_v3  ;;  %2750 = vmatprep.subr.bf16.mxu0 %v3062_v0  ;;  %v2904_v5 = vld [vmem:[#allocation7 + $0x48] sm:$0xff]   ;;  %v1754_v3 = vld [vmem:[%s3830_s14 + $0x28] sm:$0xff] }
 0x235   :  { %2447 = vmatpush3.bf16.msra.mxu1 %v2897_v7  ;;  %v2906_v7 = vld [vmem:[#allocation7 + $0x58] sm:$0xff]  }
 0x236   :  { %2440 = vmatmul.mubr.msk.f32.vlgmr.msra.gmra.mrb[6].mxu0 %vm146_vm0, %v532_v59  ;;  %2448 = vmatprep.subr.bf16.mxu1 %v2898_v8 }
 0x237   :  { %2752 = vmatpush3.bf16.msra.mxu0 %v3220_v9  ;;  %2510 = vmatprep.mubr.msk.f32.mxu0 %vm3063_vm1, %v3064_v30 }
 0x238   :  { %2753 = vmatprep.subr.bf16.mxu0 %v3062_v0 }
 0x239   :  { %2449 = vmatpush3.bf16.msra.mxu1 %v2898_v8 }
 0x23a   :  { %2454 = vmatprep.subr.bf16.mxu1 %v2899_v10 }
 0x23b   :  { %2755 = vmatpush3.bf16.msra.mxu0 %v3228_v12 }
 0x23c   :  { %2756 = vmatprep.subr.bf16.mxu0 %v3062_v0 }
 0x23f   :  { %2758 = vmatpush3.bf16.msra.mxu0 %v3237_v15 }
 0x240   :  { %2759 = vmatprep.subr.bf16.mxu0 %v3062_v0 }
 0x243   :  { %2761 = vmatpush3.bf16.msra.mxu0 %v3257_v18 }
 0x244   :  { %2762 = vmatprep.subr.bf16.mxu0 %v3062_v0 }
 0x247   :  { %2764 = vmatpush3.bf16.msra.mxu0 %v3269_v21 }
 0x248   :  { %2765 = vmatprep.subr.bf16.mxu0 %v3062_v0 }
 0x24b   :  { %2767 = vmatpush3.bf16.msra.mxu0 %v3281_v24 }
 0x24c   :  { %2768 = vmatprep.subr.bf16.mxu0 %v3062_v0 }
 0x24f   :  { %2770 = vmatpush3.bf16.msra.mxu0 %v3293_v27 }
 0x250   :  { %2771 = vmatprep.subr.bf16.mxu0 %v3062_v0 }
 0x253   :  { %2773 = vmatpush3.bf16.msra.mxu0 %v3306_v31 }
 0x254   :  { %2774 = vmatprep.subr.bf16.mxu0 %v3062_v0 }
 0x2f9   :  { %v3445_v11 = vpop.f32.mrb[4].mxu0 }
 0x2fa   :  { %v2403_v13 = vpop.f32.mrb[5].mxu0 }
 0x309   :  { %v602_v16 = vpop.f32.mrb[6].mxu0 }
 0x30a   :  { %v603_v20 = vadd.f32 1e-05, %v602_v16  ;;  %v2441_v22 = vpop.f32.mrb[7].mxu0 }
 0x30c   :  { %2933 = vrsqrt.f32 %v603_v20  ;;  %v2048_v20 = vld [vmem:[%s3825_s9] ss:$0 sm:$0xff] }
 0x316   :  { %v2934_v35 = vpop.eup %2933 }
 0x317   :  { %v607_v36 = vmul.f32 %v2934_v35, %v412_v23 }
 0x319   :  { %v612_v39 = vrot.slane %v607_v36, %v3370_v19 }
 0x31b   :  { %v614_v38 = vmul.f32 %v612_v39, %v3392_v49  ;;  %v615_v44 = vmul.f32 %v612_v39, %v3396_v50  ;;  %v616_v43 = vmul.f32 %v612_v39, %v3400_v51  ;;  %v617_v45 = vmul.f32 %v612_v39, %v3404_v52  ;;  %v2927_v52 = vld [vmem:[%s3828_s12 + $0xa0] sm:$0xff]  }
 0x31d   :  { %v624_v37 = vadd.f32 %v2029_v41, %v614_v38  ;;  %v625_v46 = vadd.f32 %v2029_v41, %v615_v44  ;;  %v626_v40 = vadd.f32 %v2029_v41, %v616_v43  ;;  %v627_v47 = vadd.f32 %v2029_v41, %v617_v45 }
 0x31f   :  { %v628_v48 = vmax.f32 %v624_v37, 0.0  ;;  %v629_v53 = vmax.f32 %v625_v46, 0.0  ;;  %v630_v54 = vmax.f32 %v626_v40, 0.0  ;;  %v631_v32 = vmax.f32 %v627_v47, 0.0 }
 0x321   :  { %v633_v4 = vpack.c.bf16 %v629_v53, %v628_v48  ;;  %v634_v33 = vpack.c.bf16 %v631_v32, %v630_v54 }
 0x323   :  { %2450 = vmatprep.mubr.msk.bf16.mxu1 %vm146_vm0, %v633_v4  ;;  %v636_v49 = vshrl.u32 %v633_v4, 16  ;;  %v639_v51 = vshll.u32 %v633_v4, 16  ;;  %v643_v42 = vshrl.u32 %v634_v33, 16  ;;  %v646_v61 = vshll.u32 %v634_v33, 16 }
 0x324   :  { %2451 = vmatmul.mubr.msk.bf16.vlgmr.msra.gmra.mrb[4].mxu1 %vm146_vm0, %v634_v33 }
 0x325   :  { %2455 = vmatpush3.bf16.msra.mxu1 %v2899_v10  ;;  %v638_v50 = vrot.slane %v636_v49, 7  ;;  %v645_v58 = vrot.slane %v643_v42, 7  ;;  %v656_v60 = vrot.slane %v639_v51, 1  ;;  %v658_v8 = vrot.slane %v646_v61, 1 }
 0x326   :  { %2456 = vmatprep.subr.bf16.mxu1 %v2900_v55 }
 0x327   :  { %v641_v14 = vor.u32 %v639_v51, %v638_v50  ;;  %v648_v63 = vor.u32 %v646_v61, %v645_v58  ;;  %v657_v2 = vor.u32 %v656_v60, %v636_v49  ;;  %v659_v10 = vor.u32 %v658_v8, %v643_v42  ;;  %v2910_v58 = vld [vmem:[%s3828_s12 + $0x58] sm:$0xff]   ;;  %v2911_v60 = vld [vmem:[%s3828_s12 + $0x60] sm:$0xff]   ;;  %v2912_v61 = vld [vmem:[%s3828_s12 + $0x68] sm:$0xff]  }
 0x329   :  { %2457 = vmatpush3.bf16.msra.mxu1 %v2900_v55  ;;  %v654_v56 = vsel %vm3460_vm4, 0, %v641_v14  ;;  %v655_v59 = vsel %vm3460_vm4, 0, %v648_v63  ;;  %v665_v1 = vsel %vm3467_vm7, %v657_v2, 0  ;;  %v666_v13 = vsel %vm3467_vm7, %v659_v10, 0  ;;  %v2914_v63 = vld [vmem:[%s3828_s12 + $0x78] sm:$0xff]   ;;  %v2915_v2 = vld [vmem:[%s3828_s12] sm:$0xff]  }
 0x32a   :  { %2462 = vmatprep.mubr.msk.bf16.mxu1 %vm146_vm0, %v654_v56  ;;  %2458 = vmatprep.subr.bf16.mxu1 %v2901_v34  ;;  %v942_v10 = vld [vmem:[%s3826_s10] sm:$0x1] }
 0x32d   :  { %2459 = vmatpush3.bf16.msra.mxu1 %v2901_v34 }
 0x32e   :  { %2460 = vmatprep.subr.bf16.mxu1 %v2902_v57 }
 0x331   :  { %2461 = vmatpush3.bf16.msra.mxu1 %v2902_v57  ;;  %v2909_v57 = vld [vmem:[%s3828_s12 + $0x50] sm:$0xff]  }
 0x332   :  { %2466 = vmatprep.subr.bf16.mxu1 %v2903_v62 }
 0x334   :  { %2463 = vmatmul.mubr.msk.bf16.vlgmr.msra.gmra.mrb[4].mxu1 %vm146_vm0, %v655_v59  ;;  %v1750_v59 = vld [vmem:[%s3830_s14 + $0x8] sm:$0xff] }
 0x335   :  { %2467 = vmatpush3.bf16.msra.mxu1 %v2903_v62  ;;  %2474 = vmatprep.mubr.msk.bf16.mxu1 %vm146_vm0, %v665_v1  ;;  %v2913_v62 = vld [vmem:[%s3828_s12 + $0x70] sm:$0xff]  }
 0x336   :  { %2468 = vmatprep.subr.bf16.mxu1 %v2904_v5 }
 0x339   :  { %2469 = vmatpush3.bf16.msra.mxu1 %v2904_v5  ;;  %v1749_v5 = vld [vmem:[%s3830_s14] sm:$0xff] }
 0x33a   :  { %2470 = vmatprep.subr.bf16.mxu1 %v2905_v6  ;;  %v2798_v1 = vpack.c.bf16 %v1750_v59, %v1749_v5  ;;  %v1751_v5 = vld [vmem:[%s3830_s14 + $0x10] sm:$0xff]  ;;  %v1752_v59 = vld [vmem:[%s3830_s14 + $0x18] sm:$0xff] }
 0x33d   :  { %2471 = vmatpush3.bf16.msra.mxu1 %v2905_v6 }
 0x33e   :  { %2472 = vmatprep.subr.bf16.mxu1 %v2906_v7 }
 0x341   :  { %2473 = vmatpush3.bf16.msra.mxu1 %v2906_v7 }
 0x344   :  { %2475 = vmatmul.mubr.msk.bf16.vlgmr.msra.gmra.mrb[4].mxu1 %vm146_vm0, %v666_v13 }
 0x417   :  { %v2476_v16 = vpop.f32.mrb[4].mxu1 }
 0x418   :  { %v913_v22 = vpop.f32.mrb[5].mxu1  ;;  %v940_v41 = vadd.f32 %v2476_v16, %v2048_v20 }
 0x419   :  { %v2477_v23 = vpop.f32.mrb[6].mxu1  ;;  %v938_v36 = vadd.f32 %v2048_v20, %v913_v22  ;;  %v2049_v22 = vld [vmem:[%s3827_s11] ss:$0 sm:$0xff] }
 0x41a   :  { %v916_v35 = vpop.f32.mrb[7].mxu1  ;;  %v941_v44 = vadd.f32 %v2477_v23, %v2048_v20 }
 0x41b   :  { %v939_v39 = vadd.f32 %v2048_v20, %v916_v35 }
 0x41d   :  { %v944_v38 = vadd.f32 %v939_v39, %v938_v36 }
 0x41f   :  { %v945_v43 = vadd.f32 %v944_v38, %v940_v41 }
 0x421   :  { %v946_v45 = vadd.f32 %v945_v43, %v941_v44 }
 0x423   :  { %v947_v37 = vrot.slane %v946_v45, 4 }
 0x425   :  { %v948_v46 = vadd.f32 %v947_v37, %v946_v45 }
 0x427   :  { %v949_v40 = vrot.slane %v948_v46, 2 }
 0x429   :  { %v950_v47 = vadd.f32 %v949_v40, %v948_v46 }
 0x42b   :  { %v951_v48 = vrot.slane %v950_v47, 1 }
 0x42d   :  { %v952_v53 = vadd.f32 %v951_v48, %v950_v47 }
 0x42f   :  { %2511 = vmatmul.mubr.f32.vlgmr.msra.gmra.mrb[8].mxu0 %v952_v53  ;;  %v2916_v53 = vld [vmem:[%s3828_s12 + $0x8] sm:$0xff]  }
 0x430   :  { %2776 = vmatpush3.bf16.msra.mxu0 %v3220_v9  ;;  %2545 = vmatprep.mubr.msk.f32.mxu0 %vm3063_vm1, %v3064_v30  ;;  %v2907_v9 = vld [vmem:[%s3828_s12 + $0x40] sm:$0xff]  }
 0x431   :  { %2777 = vmatprep.subr.bf16.mxu0 %v3062_v0  ;;  %2548 = vmatprep.subr.bf16.mxu1 %v2907_v9 }
 0x432   :  { %2549 = vmatpush3.bf16.msra.mxu1 %v2907_v9 }
 0x434   :  { %2779 = vmatpush3.bf16.msra.mxu0 %v3228_v12  ;;  %v2908_v12 = vld [vmem:[%s3828_s12 + $0x48] sm:$0xff]  }
 0x435   :  { %2780 = vmatprep.subr.bf16.mxu0 %v3062_v0  ;;  %2550 = vmatprep.subr.bf16.mxu1 %v2908_v12 }
 0x436   :  { %2551 = vmatpush3.bf16.msra.mxu1 %v2908_v12 }
 0x437   :  { %2552 = vmatprep.subr.bf16.mxu1 %v2909_v57 }
 0x438   :  { %2782 = vmatpush3.bf16.msra.mxu0 %v3237_v15 }
 0x439   :  { %2783 = vmatprep.subr.bf16.mxu0 %v3062_v0 }
 0x43a   :  { %2553 = vmatpush3.bf16.msra.mxu1 %v2909_v57  ;;  %v2926_v57 = vld [vmem:[%s3828_s12 + $0x98] sm:$0xff]  }
 0x43b   :  { %2554 = vmatprep.subr.bf16.mxu1 %v2910_v58 }
 0x43c   :  { %2785 = vmatpush3.bf16.msra.mxu0 %v3257_v18 }
 0x43d   :  { %2786 = vmatprep.subr.bf16.mxu0 %v3062_v0 }
 0x43e   :  { %2555 = vmatpush3.bf16.msra.mxu1 %v2910_v58  ;;  %v2928_v58 = vld [vmem:[%s3828_s12 + $0xa8] sm:$0xff]  }
 0x43f   :  { %2556 = vmatprep.subr.bf16.mxu1 %v2911_v60 }
 0x440   :  { %2788 = vmatpush3.bf16.msra.mxu0 %v3269_v21 }
 0x441   :  { %2789 = vmatprep.subr.bf16.mxu0 %v3062_v0 }
 0x442   :  { %2557 = vmatpush3.bf16.msra.mxu1 %v2911_v60  ;;  %v2929_v60 = vld [vmem:[%s3828_s12 + $0xb0] sm:$0xff]  }
 0x443   :  { %2558 = vmatprep.subr.bf16.mxu1 %v2912_v61 }
 0x444   :  { %2791 = vmatpush3.bf16.msra.mxu0 %v3281_v24 }
 0x445   :  { %2792 = vmatprep.subr.bf16.mxu0 %v3062_v0 }
 0x446   :  { %2559 = vmatpush3.bf16.msra.mxu1 %v2912_v61  ;;  %v2930_v61 = vld [vmem:[%s3828_s12 + $0xb8] sm:$0xff]  }
 0x447   :  { %2560 = vmatprep.subr.bf16.mxu1 %v2913_v62 }
 0x448   :  { %2794 = vmatpush3.bf16.msra.mxu0 %v3293_v27 }
 0x449   :  { %2795 = vmatprep.subr.bf16.mxu0 %v3062_v0 }
 0x44a   :  { %2561 = vmatpush3.bf16.msra.mxu1 %v2913_v62 }
 0x44b   :  { %2562 = vmatprep.subr.bf16.mxu1 %v2914_v63 }
 0x44c   :  { %2797 = vmatpush3.bf16.msra.mxu0 %v3306_v31 }
 0x44d   :  { %2799 = vmatprep.subr.bf16.mxu0 %v2798_v1 }
 0x44e   :  { %2563 = vmatpush3.bf16.msra.mxu1 %v2914_v63 }
 0x44f   :  { %2568 = vmatprep.subr.bf16.mxu1 %v2915_v2 }
 0x502   :  { %v1019_v15 = vpop.f32.mrb[8].mxu0 }
 0x503   :  { %v1026_v18 = vrot.slane %v1019_v15, %v3370_v19  ;;  %v2512_v21 = vpop.f32.mrb[9].mxu0 }
 0x505   :  { %v1027_v24 = vsub.f32 %v938_v36, %v1026_v18  ;;  %v1028_v0 = vsub.f32 %v939_v39, %v1026_v18  ;;  %v1029_v27 = vsub.f32 %v940_v41, %v1026_v18  ;;  %v1030_v30 = vsub.f32 %v941_v44, %v1026_v18  ;;  %v2917_v18 = vld [vmem:[%s3828_s12 + $0x10] sm:$0xff]  }
 0x507   :  { %v1031_v31 = vmul.f32 %v1027_v24, %v1027_v24  ;;  %v1032_v54 = vmul.f32 %v1028_v0, %v1028_v0  ;;  %v1033_v32 = vmul.f32 %v1029_v27, %v1029_v27  ;;  %v1034_v33 = vmul.f32 %v1030_v30, %v1030_v30 }
 0x509   :  { %v1035_v4 = vadd.f32 %v1032_v54, %v1031_v31  ;;  %v2921_v31 = vld [vmem:[%s3828_s12 + $0x30] sm:$0xff]  }
 0x50b   :  { %v1036_v55 = vadd.f32 %v1035_v4, %v1033_v32  ;;  %v2922_v32 = vld [vmem:[%s3828_s12 + $0x38] sm:$0xff]  }
 0x50d   :  { %v1037_v49 = vadd.f32 %v1036_v55, %v1034_v33 }
 0x50f   :  { %v1038_v50 = vrot.slane %v1037_v49, 4 }
 0x511   :  { %v1039_v51 = vadd.f32 %v1038_v50, %v1037_v49  ;;  %v2923_v49 = vld [vmem:[%s3828_s12 + $0x80] sm:$0xff]  }
 0x513   :  { %v1040_v34 = vrot.slane %v1039_v51, 2 }
 0x515   :  { %v1041_v14 = vadd.f32 %v1040_v34, %v1039_v51  ;;  %v2924_v34 = vld [vmem:[%s3828_s12 + $0x88] sm:$0xff]  }
 0x517   :  { %v1042_v42 = vrot.slane %v1041_v14, 1 }
 0x519   :  { %v1043_v56 = vadd.f32 %v1042_v42, %v1041_v14 }
 0x51b   :  { %2546 = vmatmul.mubr.f32.vlgmr.msra.gmra.mrb[10].mxu0 %v1043_v56  ;;  %v2925_v56 = vld [vmem:[%s3828_s12 + $0x90] sm:$0xff]  }
 0x51c   :  { %2801 = vmatpush3.bf16.msra.mxu0 %v2798_v1  ;;  %v2802_v1 = vpack.c.bf16 %v1752_v59, %v1751_v5 }
 0x51e   :  { %2803 = vmatprep.subr.bf16.mxu0 %v2802_v1 }
 0x520   :  { %2805 = vmatpush3.bf16.msra.mxu0 %v2802_v1 }
 0x5ee   :  { %v1110_v6 = vpop.f32.mrb[10].mxu0 }
 0x5ef   :  { %v1111_v7 = vadd.f32 1e-05, %v1110_v6  ;;  %v2547_v8 = vpop.f32.mrb[11].mxu0  ;;  %v1753_v6 = vld [vmem:[%s3830_s14 + $0x20] sm:$0xff] }
 0x5f0   :  { %v1755_v8 = vld [vmem:[%s3830_s14 + $0x30] sm:$0xff] }
 0x5f1   :  { %2935 = vrsqrt.f32 %v1111_v7  ;;  %v2806_v7 = vpack.c.bf16 %v1754_v3, %v1753_v6 }
 0x5f3   :  { %2807 = vmatprep.subr.bf16.mxu0 %v2806_v7 }
 0x5f4   :  { %2809 = vmatpush3.bf16.msra.mxu0 %v2806_v7 }
 0x5fb   :  { %v2936_v13 = vpop.eup %2935 }
 0x5fc   :  { %v1115_v16 = vmul.f32 %v2936_v13, %v942_v10  ;;  %v1756_v10 = vld [vmem:[%s3830_s14 + $0x38] sm:$0xff] }
 0x5fd   :  { %v2810_v13 = vpack.c.bf16 %v1756_v10, %v1755_v8 }
 0x5fe   :  { %v1120_v20 = vrot.slane %v1115_v16, %v3370_v19  ;;  %v1757_v16 = vld [vmem:[%s3830_s14 + $0x40] sm:$0xff] }
 0x5ff   :  { %2811 = vmatprep.subr.bf16.mxu0 %v2810_v13 }
 0x600   :  { %v1122_v23 = vmul.f32 %v1120_v20, %v1027_v24  ;;  %v1123_v35 = vmul.f32 %v1120_v20, %v1028_v0  ;;  %v1124_v36 = vmul.f32 %v1120_v20, %v1029_v27  ;;  %v1125_v39 = vmul.f32 %v1120_v20, %v1030_v30  ;;  %v2918_v0 = vld [vmem:[%s3828_s12 + $0x18] sm:$0xff]   ;;  %v2919_v27 = vld [vmem:[%s3828_s12 + $0x20] sm:$0xff]   ;;  %v2920_v30 = vld [vmem:[%s3828_s12 + $0x28] sm:$0xff]   ;;  %2813 = vmatpush3.bf16.msra.mxu0 %v2810_v13 }
 0x601   :  { %v1758_v20 = vld [vmem:[%s3830_s14 + $0x48] sm:$0xff] }
 0x602   :  { %v1132_v41 = vadd.f32 %v2049_v22, %v1122_v23  ;;  %v1133_v38 = vadd.f32 %v2049_v22, %v1123_v35  ;;  %v1134_v44 = vadd.f32 %v2049_v22, %v1124_v36  ;;  %v1135_v43 = vadd.f32 %v2049_v22, %v1125_v39  ;;  %v1759_v23 = vld [vmem:[%s3830_s14 + $0x50] sm:$0xff]  ;;  %v1760_v35 = vld [vmem:[%s3830_s14 + $0x58] sm:$0xff]  ;;  %v1761_v39 = vld [vmem:[%s3830_s14 + $0x60] sm:$0xff] }
 0x603   :  { %v2814_v22 = vpack.c.bf16 %v1758_v20, %v1757_v16  ;;  %v2818_v36 = vpack.c.bf16 %v1760_v35, %v1759_v23 }
 0x604   :  { %v1136_v45 = vmax.f32 %v1132_v41, 0.0  ;;  %v1137_v37 = vmax.f32 %v1133_v38, 0.0  ;;  %v1138_v46 = vmax.f32 %v1134_v44, 0.0  ;;  %v1139_v40 = vmax.f32 %v1135_v43, 0.0  ;;  %v1762_v41 = vld [vmem:[%s3830_s14 + $0x68] sm:$0xff]  ;;  %v1763_v38 = vld [vmem:[%s3830_s14 + $0x70] sm:$0xff] }
 0x605   :  { %2815 = vmatprep.subr.bf16.mxu0 %v2814_v22  ;;  %v2822_v44 = vpack.c.bf16 %v1762_v41, %v1761_v39  ;;  %v1764_v43 = vld [vmem:[%s3830_s14 + $0x78] sm:$0xff] }
 0x606   :  { %v1141_v47 = vpack.c.bf16 %v1137_v37, %v1136_v45  ;;  %v3541_v48 = vpack.c.bf16 %v1139_v40, %v1138_v46  ;;  %2817 = vmatpush3.bf16.msra.mxu0 %v2814_v22  ;;  %v2826_v45 = vpack.c.bf16 %v1764_v43, %v1763_v38  ;;  %v2111_v37 = vld [vmem:[%s3830_s14 + $0x80] sm:$0xff]  ;;  %v2112_v46 = vld [vmem:[%s3830_s14 + $0x88] sm:$0xff] }
 0x607   :  { %2819 = vmatprep.subr.bf16.mxu0 %v2818_v36  ;;  %v3647_v40 = vpack.c.bf16 %v2112_v46, %v2111_v37 }
 0x608   :  { %2564 = vmatprep.mubr.bf16.mxu1 %v1141_v47  ;;  %v1144_v9 = vshrl.u32 %v1141_v47, 16  ;;  %v1147_v15 = vshll.u32 %v1141_v47, 16  ;;  %v1151_v54 = vshrl.u32 %v3541_v48, 16  ;;  %v1154_v55 = vshll.u32 %v3541_v48, 16 }
 0x609   :  { %2565 = vmatmul.mubr.bf16.vlgmr.msra.gmra.mrb[8].mxu1 %v3541_v48  ;;  %v387_v47 = vadd.f32 1e-05, %v3445_v11  ;;  %v2106_v11 = vld [vmem:[%s3829_s13] ss:$0 sm:$0xff]  ;;  %s3066_s13 = smov [#allocation8]  }
 0x60a   :  { %2569 = vmatpush3.bf16.msra.mxu1 %v2915_v2  ;;  %v1146_v12 = vrot.slane %v1144_v9, 7  ;;  %v1153_v4 = vrot.slane %v1151_v54, 7  ;;  %v1161_v33 = vrot.slane %v1147_v15, 1  ;;  %v1163_v62 = vrot.slane %v1154_v55, 1  ;;  %2821 = vmatpush3.bf16.msra.mxu0 %v2818_v36  ;;  %s1989_s10 = sshll.u32 %s3066_s13, 4  ;;  %s1990_s10 = int_to_ptr.vmem [resolvable:$true] %s1989_s10 }
 0x60b   :  { %2570 = vmatprep.subr.bf16.mxu1 %v2916_v53  ;;  %2823 = vmatprep.subr.bf16.mxu0 %v2822_v44  ;;  %2937 = vrsqrt.f32 %v387_v47  ;;  %s3005_s29 = scalar_lea.vmem %s1990_s10, 256  ;;  %p3010_p11 = scmp.lt.s32.totalorder %s1990_s10, %s1990_s10 }
 0x60c   :  { %v1149_v21 = vor.u32 %v1147_v15, %v1146_v12  ;;  %v1156_v50 = vor.u32 %v1154_v55, %v1153_v4  ;;  %v1162_v51 = vor.u32 %v1161_v33, %v1144_v9  ;;  %v1164_v63 = vor.u32 %v1163_v62, %v1151_v54  ;;  %p3006_p10 = scmp.ne.s32.totalorder %s1990_s10, %s3005_s29  ;;  %p3011_p12 = scmp.lt.s32.totalorder %s3005_s29, %s3005_s29 }
 0x60d   :  { %v3065_v12 = vmov 1983009808  }
 0x60e   :  { %2571 = vmatpush3.bf16.msra.mxu1 %v2916_v53  ;;  %v1159_v24 = vsel %vm3460_vm4, 0, %v1149_v21  ;;  %v1160_v14 = vsel %vm3460_vm4, 0, %v1156_v50  ;;  %v1167_v42 = vsel %vm3467_vm7, %v1162_v51, 0  ;;  %v1168_v2 = vsel %vm3467_vm7, %v1164_v63, 0  ;;  %2825 = vmatpush3.bf16.msra.mxu0 %v2822_v44  ;;  %v202_v53 = vld [vmem:[%s3820_s4] sm:$0x1]  ;;  %p3012_p13 = por %p3011_p12, %p3010_p11 }
 0x60f   :  { %2584 = vmatprep.mubr.bf16.mxu1 %v1159_v24  ;;  %2572 = vmatprep.subr.bf16.mxu1 %v2917_v18  ;;  %v1554_v15 = vunpack.c.l.s4 %v3065_v12 }
 0x610   :  { %2827 = vmatprep.subr.bf16.mxu0 %v2826_v45  ;;  %p3013_p0 = pnand %p3012_p13, %p3006_p10 }
 0x611   :  { %v1555_v21 = vunpack.c.0.s8 %v1554_v15 }
 0x612   :  { %2573 = vmatpush3.bf16.msra.mxu1 %v2917_v18  ;;  %2829 = vmatpush3.bf16.msra.mxu0 %v2826_v45 }
 0x613   :  { %2574 = vmatprep.subr.bf16.mxu1 %v2918_v0  ;;  %2831 = vmatprep.subr.bf16.mxu0 %v3647_v40 }
 0x615   :  { %v2938_v48 = vpop.eup %2937 }
 0x616   :  { %2575 = vmatpush3.bf16.msra.mxu1 %v2918_v0  ;;  %v391_v9 = vmul.f32 %v2938_v48, %v202_v53  ;;  %v2026_v0 = vld [vmem:[%s3821_s5] ss:$0 sm:$0xff] }
 0x617   :  { %2576 = vmatprep.subr.bf16.mxu1 %v2919_v27 }
 0x618   :  { %v396_v18 = vrot.slane %v391_v9, %v3370_v19  ;;  %v3666_v19 = vsub.s32 %v1555_v21, %v3367_v17 }
 0x61a   :  { %2577 = vmatpush3.bf16.msra.mxu1 %v2919_v27  ;;  %v400_v24 = vmul.f32 %v396_v18, %v3377_v28  ;;  %v398_v27 = vmul.f32 %v396_v18, %v3373_v25  ;;  %v399_v54 = vmul.f32 %v396_v18, %v3375_v26 }
 0x61b   :  { %2578 = vmatprep.subr.bf16.mxu1 %v2920_v30 }
 0x61c   :  { %v408_v33 = vadd.f32 %v2026_v0, %v398_v27 }
 0x61e   :  { %2579 = vmatpush3.bf16.msra.mxu1 %v2920_v30  ;;  %v401_v30 = vmul.f32 %v396_v18, %v3379_v29  ;;  %v409_v29 = vadd.f32 %v2026_v0, %v399_v54 }
 0x61f   :  { %2580 = vmatprep.subr.bf16.mxu1 %v2921_v31 }
 0x620   :  { %v411_v51 = vadd.f32 %v2026_v0, %v401_v30 }
 0x622   :  { %2581 = vmatpush3.bf16.msra.mxu1 %v2921_v31 }
 0x623   :  { %2582 = vmatprep.subr.bf16.mxu1 %v2922_v32 }
 0x626   :  { %2583 = vmatpush3.bf16.msra.mxu1 %v2922_v32  ;;  %v410_v32 = vadd.f32 %v2026_v0, %v400_v24 }
 0x627   :  { %2588 = vmatprep.subr.bf16.mxu1 %v2923_v49 }
 0x629   :  { %2585 = vmatmul.mubr.bf16.vlgmr.msra.gmra.mrb[8].mxu1 %v1160_v14 }
 0x62a   :  { %2589 = vmatpush3.bf16.msra.mxu1 %v2923_v49  ;;  %2604 = vmatprep.mubr.bf16.mxu1 %v1167_v42 }
 0x62b   :  { %2590 = vmatprep.subr.bf16.mxu1 %v2924_v34 }
 0x62e   :  { %2591 = vmatpush3.bf16.msra.mxu1 %v2924_v34 }
 0x62f   :  { %2592 = vmatprep.subr.bf16.mxu1 %v2925_v56 }
 0x632   :  { %2593 = vmatpush3.bf16.msra.mxu1 %v2925_v56 }
 0x633   :  { %2594 = vmatprep.subr.bf16.mxu1 %v2926_v57 }
 0x636   :  { %2595 = vmatpush3.bf16.msra.mxu1 %v2926_v57 }
 0x637   :  { %2596 = vmatprep.subr.bf16.mxu1 %v2927_v52 }
 0x63a   :  { %2597 = vmatpush3.bf16.msra.mxu1 %v2927_v52 }
 0x63b   :  { %2598 = vmatprep.subr.bf16.mxu1 %v2928_v58 }
 0x63e   :  { %2599 = vmatpush3.bf16.msra.mxu1 %v2928_v58 }
 0x63f   :  { %2600 = vmatprep.subr.bf16.mxu1 %v2929_v60 }
 0x642   :  { %2601 = vmatpush3.bf16.msra.mxu1 %v2929_v60 }
 0x643   :  { %2602 = vmatprep.subr.bf16.mxu1 %v2930_v61 }
 0x646   :  { %2603 = vmatpush3.bf16.msra.mxu1 %v2930_v61 }
 0x649   :  { %2605 = vmatmul.mubr.bf16.vlgmr.msra.gmra.mrb[8].mxu1 %v1168_v2 }
 0x71c   :  { %v2606_v31 = vpop.f32.mrb[8].mxu1 }
 0x71d   :  { %v1522_v28 = vadd.f32 %v2606_v31, %v2106_v11  ;;  %v1495_v4 = vpop.f32.mrb[9].mxu1 }
 0x71e   :  { %v1520_v55 = vadd.f32 %v2106_v11, %v1495_v4  ;;  %v2607_v49 = vpop.f32.mrb[10].mxu1 }
 0x71f   :  { %v3668_v50 = vadd.f32 %v1522_v28, %v410_v32  ;;  %v1523_v34 = vadd.f32 %v2607_v49, %v2106_v11  ;;  %v1498_v14 = vpop.f32.mrb[11].mxu1 }
 0x720   :  { %v3670_v25 = vadd.f32 %v1520_v55, %v408_v33  ;;  %v1521_v42 = vadd.f32 %v2106_v11, %v1498_v14 }
 0x721   :  { %v1586_v17 = vcombine.high %v3668_v50, %v3668_v50  ;;  %v1593_v26 = vrot.slane %v3668_v50, %v3666_v19  ;;  %v3676_v56 = vadd.f32 %v1523_v34, %v411_v51 }
 0x722   :  { %v1552_v57 = vcombine.high %v3670_v25, %v3670_v25  ;;  %v1559_v52 = vrot.slane %v3670_v25, %v3666_v19  ;;  %v3682_v58 = vadd.f32 %v1521_v42, %v409_v29 }
 0x723   :  { %v1600_v60 = vrot.slane %v1586_v17, %v3666_v19  ;;  %v1601_v61 = vcombine.high %v1593_v26, %v1593_v26  ;;  %v1693_v62 = vsel %vm1636_vm8, %v1593_v26, -inf  ;;  %v1603_v63 = vcombine.high %v3676_v56, %v3676_v56 }
 0x724   :  { %v1694_v2 = vrot.slane %v1693_v62, 4  ;;  %v1566_v5 = vrot.slane %v1552_v57, %v3666_v19  ;;  %v1567_v59 = vcombine.high %v1559_v52, %v1559_v52  ;;  %v1637_v1 = vsel %vm1636_vm8, %v1559_v52, -inf }
 0x725   :  { %v1602_v6 = vcombine.high %v1600_v60, %v1600_v60  ;;  %v1700_v3 = vsel %vm1636_vm8, %v1601_v61, -inf  ;;  %v1707_v7 = vsel %vm1636_vm8, %v1600_v60, -inf  ;;  %v1638_v8 = vrot.slane %v1637_v1, 4 }
 0x726   :  { %v1695_v10 = vmax.f32 %v1693_v62, %v1694_v2  ;;  %v1701_v13 = vrot.slane %v1700_v3, 4  ;;  %v1708_v16 = vrot.slane %v1707_v7, 4  ;;  %v1568_v20 = vcombine.high %v1566_v5, %v1566_v5 }
 0x727   :  { %v1714_v22 = vsel %vm1636_vm8, %v1602_v6, -inf  ;;  %v1639_v23 = vmax.f32 %v1637_v1, %v1638_v8  ;;  %v1644_v35 = vsel %vm1636_vm8, %v1567_v59, -inf  ;;  %v1651_v36 = vsel %vm1636_vm8, %v1566_v5, -inf }
 0x728   :  { %v1696_v39 = vrot.slane %v1695_v10, 2  ;;  %v1702_v41 = vmax.f32 %v1700_v3, %v1701_v13  ;;  %v1709_v38 = vmax.f32 %v1707_v7, %v1708_v16  ;;  %v1715_v44 = vrot.slane %v1714_v22, 4 }
 0x729   :  { %v1640_v43 = vrot.slane %v1639_v23, 2  ;;  %v1645_v45 = vrot.slane %v1644_v35, 4  ;;  %v1652_v37 = vrot.slane %v1651_v36, 4  ;;  %v1658_v46 = vsel %vm1636_vm8, %v1568_v20, -inf }
 0x72a   :  { %v1697_v47 = vmax.f32 %v1695_v10, %v1696_v39  ;;  %v1703_v48 = vrot.slane %v1702_v41, 2  ;;  %v1710_v53 = vrot.slane %v1709_v38, 2  ;;  %v1716_v9 = vmax.f32 %v1714_v22, %v1715_v44 }
 0x72b   :  { %v1641_v12 = vmax.f32 %v1639_v23, %v1640_v43  ;;  %v1646_v15 = vmax.f32 %v1644_v35, %v1645_v45  ;;  %v1653_v18 = vmax.f32 %v1651_v36, %v1652_v37  ;;  %v1659_v21 = vrot.slane %v1658_v46, 4 }
 0x72c   :  { %v1698_v24 = vrot.slane %v1697_v47, 1  ;;  %v1704_v0 = vmax.f32 %v1702_v41, %v1703_v48  ;;  %v1711_v11 = vmax.f32 %v1709_v38, %v1710_v53  ;;  %v1717_v27 = vrot.slane %v1716_v9, 2 }
 0x72d   :  { %v1642_v30 = vrot.slane %v1641_v12, 1  ;;  %v1647_v31 = vrot.slane %v1646_v15, 2  ;;  %v1654_v54 = vrot.slane %v1653_v18, 2  ;;  %v1660_v32 = vmax.f32 %v1658_v46, %v1659_v21 }
 0x72e   :  { %v3696_v28 = vmax.f32 %v1697_v47, %v1698_v24  ;;  %v1705_v4 = vrot.slane %v1704_v0, 1  ;;  %v1712_v33 = vrot.slane %v1711_v11, 1  ;;  %v3698_v55 = vmax.f32 %v1716_v9, %v1717_v27 }
 0x72f   :  { %v1643_v49 = vmax.f32 %v1641_v12, %v1642_v30  ;;  %v1648_v51 = vmax.f32 %v1646_v15, %v1647_v31  ;;  %v1655_v34 = vmax.f32 %v1653_v18, %v1654_v54  ;;  %v1661_v14 = vrot.slane %v1660_v32, 2 }
 0x730   :  { %v3700_v29 = vmax.f32 %v1704_v0, %v1705_v4  ;;  %v3702_v42 = vmax.f32 %v1711_v11, %v1712_v33  ;;  %v1719_v17 = vrot.slane %v3698_v55, 1  ;;  %v1610_v26 = vrot.slane %v3676_v56, %v3666_v19 }
 0x731   :  { %v1649_v57 = vrot.slane %v1648_v51, 1  ;;  %v1656_v52 = vrot.slane %v1655_v34, 1  ;;  %v1662_v60 = vmax.f32 %v1660_v32, %v1661_v14  ;;  %v1617_v61 = vrot.slane %v1603_v63, %v3666_v19 }
 0x732   :  { %v1618_v62 = vcombine.high %v1610_v26, %v1610_v26  ;;  %v1721_v2 = vsel %vm1636_vm8, %v1610_v26, -inf  ;;  %v1569_v5 = vcombine.high %v3682_v58, %v3682_v58  ;;  %v1576_v59 = vrot.slane %v3682_v58, %v3666_v19 }
 0x733   :  { %v1650_v1 = vmax.f32 %v1648_v51, %v1649_v57  ;;  %v1657_v6 = vmax.f32 %v1655_v34, %v1656_v52  ;;  %v1619_v3 = vcombine.high %v1617_v61, %v1617_v61  ;;  %v1722_v7 = vrot.slane %v1721_v2, 4 }
 0x734   :  { %v1728_v8 = vsel %vm1636_vm8, %v1618_v62, -inf  ;;  %v1735_v10 = vsel %vm1636_vm8, %v1617_v61, -inf  ;;  %v1583_v63 = vrot.slane %v1569_v5, %v3666_v19  ;;  %v1584_v13 = vcombine.high %v1576_v59, %v1576_v59 }
 0x735   :  { %v1723_v16 = vmax.f32 %v1721_v2, %v1722_v7  ;;  %v1729_v20 = vrot.slane %v1728_v8, 4  ;;  %v1736_v22 = vrot.slane %v1735_v10, 4  ;;  %v1665_v23 = vsel %vm1636_vm8, %v1576_v59, -inf }
 0x736   :  { %v1585_v35 = vcombine.high %v1583_v63, %v1583_v63  ;;  %v1666_v36 = vrot.slane %v1665_v23, 4  ;;  %v1672_v39 = vsel %vm1636_vm8, %v1584_v13, -inf  ;;  %v1679_v41 = vsel %vm1636_vm8, %v1583_v63, -inf }
 0x737   :  { %v1724_v38 = vrot.slane %v1723_v16, 2  ;;  %v1730_v44 = vmax.f32 %v1728_v8, %v1729_v20  ;;  %v1737_v43 = vmax.f32 %v1735_v10, %v1736_v22  ;;  %v1673_v45 = vrot.slane %v1672_v39, 4 }
 0x738   :  { %v1667_v37 = vmax.f32 %v1665_v23, %v1666_v36  ;;  %v1680_v46 = vrot.slane %v1679_v41, 4  ;;  %v1663_v19 = vrot.slane %v1662_v60, 1  ;;  %v1686_v47 = vsel %vm1636_vm8, %v1585_v35, -inf }
 0x739   :  { %v1725_v48 = vmax.f32 %v1723_v16, %v1724_v38  ;;  %v1731_v53 = vrot.slane %v1730_v44, 2  ;;  %v1738_v9 = vrot.slane %v1737_v43, 2  ;;  %v1674_v12 = vmax.f32 %v1672_v39, %v1673_v45  ;;  %v2113_v45 = vld [vmem:[%s3830_s14 + $0x90] sm:$0xff] }
 0x73a   :  { %v1668_v15 = vrot.slane %v1667_v37, 2  ;;  %v1681_v18 = vmax.f32 %v1679_v41, %v1680_v46  ;;  %v1664_v21 = vmax.f32 %v1662_v60, %v1663_v19  ;;  %v1687_v24 = vrot.slane %v1686_v47, 4 }
 0x73b   :  { %v1726_v0 = vrot.slane %v1725_v48, 1  ;;  %v1732_v11 = vmax.f32 %v1730_v44, %v1731_v53  ;;  %v1675_v27 = vrot.slane %v1674_v12, 2  ;;  %v1782_v30 = vsel %vm1781_vm9, %v1650_v1, %v1643_v49 }
 0x73c   :  { %v1669_v31 = vmax.f32 %v1667_v37, %v1668_v15  ;;  %v1682_v54 = vrot.slane %v1681_v18, 2  ;;  %v1688_v32 = vmax.f32 %v1686_v47, %v1687_v24  ;;  %v1784_v4 = vsel %vm1783_vm10, %v1657_v6, %v1782_v30  ;;  %v2117_v47 = vld [vmem:[%s3830_s14 + $0xb0] sm:$0xff]  ;;  %v2123_v24 = vld [vmem:[%s3830_s14 + $0xe0] sm:$0xff]  ;;  %v2126_v30 = vld [vmem:[%s3830_s14 + $0xf8] sm:$0xff] }
 0x73d   :  { %v1727_v33 = vmax.f32 %v1725_v48, %v1726_v0  ;;  %v1676_v51 = vmax.f32 %v1674_v12, %v1675_v27  ;;  %v1786_v34 = vsel %vm1785_vm11, %v1664_v21, %v1784_v4  ;;  %v1720_v14 = vmax.f32 %v3698_v55, %v1719_v17  ;;  %v2118_v48 = vld [vmem:[%s3830_s14 + $0xb8] sm:$0xff]  ;;  %v2121_v15 = vld [vmem:[%s3830_s14 + $0xd0] sm:$0xff]  ;;  %v2124_v0 = vld [vmem:[%s3830_s14 + $0xe8] sm:$0xff] }
 0x73e   :  { %v1670_v26 = vrot.slane %v1669_v31, 1  ;;  %v1683_v57 = vmax.f32 %v1681_v18, %v1682_v54  ;;  %v1689_v52 = vrot.slane %v1688_v32, 2  ;;  %v1733_v60 = vrot.slane %v1732_v11, 1  ;;  %v2122_v18 = vld [vmem:[%s3830_s14 + $0xd8] sm:$0xff]  ;;  %v2125_v27 = vld [vmem:[%s3830_s14 + $0xf0] sm:$0xff] }
 0x73f   :  { %v1677_v61 = vrot.slane %v1676_v51, 1  ;;  %v1739_v62 = vmax.f32 %v1737_v43, %v1738_v9  ;;  %v1742_v49 = vsel %vm1636_vm8, %v1619_v3, -inf  ;;  %v1795_v2 = vsel %vm1781_vm9, %v3700_v29, %v3696_v28  ;;  %v2119_v9 = vld [vmem:[%s3830_s14 + $0xc0] sm:$0xff] }
 0x740   :  { %v1671_v5 = vmax.f32 %v1669_v31, %v1670_v26  ;;  %v1684_v59 = vrot.slane %v1683_v57, 1  ;;  %v1690_v1 = vmax.f32 %v1688_v32, %v1689_v52  ;;  %v1734_v6 = vmax.f32 %v1732_v11, %v1733_v60 }
 0x741   :  { %v1678_v7 = vmax.f32 %v1676_v51, %v1677_v61  ;;  %v1740_v8 = vrot.slane %v1739_v62, 1  ;;  %v1743_v10 = vrot.slane %v1742_v49, 4  ;;  %v1796_v55 = vsel %vm1783_vm10, %v3702_v42, %v1795_v2 }
 0x742   :  { %v1685_v17 = vmax.f32 %v1683_v57, %v1684_v59  ;;  %v1691_v63 = vrot.slane %v1690_v1, 1  ;;  %v1788_v13 = vsel %vm1787_vm12, %v1671_v5, %v1786_v34  ;;  %v1797_v3 = vsel %vm1785_vm11, %v1720_v14, %v1796_v55 }
 0x743   :  { %v1790_v16 = vsel %vm1789_vm13, %v1678_v7, %v1788_v13  ;;  %v1741_v20 = vmax.f32 %v1739_v62, %v1740_v8  ;;  %v1744_v28 = vmax.f32 %v1742_v49, %v1743_v10  ;;  %v1798_v29 = vsel %vm1787_vm12, %v1727_v33, %v1797_v3 }
 0x744   :  { %v1692_v22 = vmax.f32 %v1690_v1, %v1691_v63  ;;  %v1792_v23 = vsel %vm1791_vm14, %v1685_v17, %v1790_v16  ;;  %v1799_v35 = vsel %vm1789_vm13, %v1734_v6, %v1798_v29  ;;  %v2138_v42 = vpack.c.bf16 %v3682_v58, %v3670_v25  ;;  %v2114_v25 = vld [vmem:[%s3830_s14 + $0x98] sm:$0xff] }
 0x745   :  { %v1745_v36 = vrot.slane %v1744_v28, 2  ;;  %v1800_v39 = vsel %vm1791_vm14, %v1741_v20, %v1799_v35  ;;  %v2143_v41 = vpack.c.bf16 %v3676_v56, %v3668_v50  ;;  %v2834_v37 = vpack.c.bf16 %v2114_v25, %v2113_v45  ;;  %v2115_v50 = vld [vmem:[%s3830_s14 + $0xa0] sm:$0xff]  ;;  %v2116_v56 = vld [vmem:[%s3830_s14 + $0xa8] sm:$0xff] }
 0x746   :  { %v1794_v38 = vsel %vm1793_vm15, %v1692_v22, %v1792_v23  ;;  %2139 = vst [vmem:[#allocation8] sm:$0xff] %v2138_v42   ;;  %v2838_v19 = vpack.c.bf16 %v2116_v56, %v2115_v50  ;;  %v2842_v53 = vpack.c.bf16 %v2118_v48, %v2117_v47  ;;  %v2850_v21 = vpack.c.bf16 %v2122_v18, %v2121_v15 }
 0x747   :  { %2640 = vmatprep.mubr.f32.mxu0 %v1794_v38  ;;  %v1746_v44 = vmax.f32 %v1744_v28, %v1745_v36  ;;  %2145 = vst [vmem:[#allocation8 + $0x8] sm:$0xff] %v2143_v41   ;;  %v2854_v11 = vpack.c.bf16 %v2124_v0, %v2123_v24  ;;  %v2858_v31 = vpack.c.bf16 %v2126_v30, %v2125_v27 }
 0x749   :  { %v1747_v43 = vrot.slane %v1746_v44, 1 }
 0x74b   :  { %v1748_v58 = vmax.f32 %v1746_v44, %v1747_v43 }
 0x74d   :  { %v1801_v46 = vsel %vm1793_vm15, %v1748_v58, %v1800_v39 }
 0x74e   :  { %2641 = vmatmul.mubr.f32.vlgmr.msra.gmra.mrb[12].mxu0 %v1801_v46 }
 0x74f   :  { %2833 = vmatpush3.bf16.msra.mxu0 %v3647_v40  ;;  %2675 = vmatprep.mubr.f32.mxu0 %v1794_v38  ;;  %v2120_v40 = vld [vmem:[%s3830_s14 + $0xc8] sm:$0xff] }
 0x750   :  { %2835 = vmatprep.subr.bf16.mxu0 %v2834_v37  ;;  %v2846_v12 = vpack.c.bf16 %v2120_v40, %v2119_v9 }
 0x753   :  { %2837 = vmatpush3.bf16.msra.mxu0 %v2834_v37 }
 0x754   :  { %2839 = vmatprep.subr.bf16.mxu0 %v2838_v19 }
 0x757   :  { %2841 = vmatpush3.bf16.msra.mxu0 %v2838_v19 }
 0x758   :  { %2843 = vmatprep.subr.bf16.mxu0 %v2842_v53 }
 0x75b   :  { %2845 = vmatpush3.bf16.msra.mxu0 %v2842_v53 }
 0x75c   :  { %2847 = vmatprep.subr.bf16.mxu0 %v2846_v12 }
 0x75f   :  { %2849 = vmatpush3.bf16.msra.mxu0 %v2846_v12 }
 0x760   :  { %2851 = vmatprep.subr.bf16.mxu0 %v2850_v21 }
 0x763   :  { %2853 = vmatpush3.bf16.msra.mxu0 %v2850_v21 }
 0x764   :  { %2855 = vmatprep.subr.bf16.mxu0 %v2854_v11 }
 0x767   :  { %2857 = vmatpush3.bf16.msra.mxu0 %v2854_v11 }
 0x768   :  { %2859 = vmatprep.subr.bf16.mxu0 %v2858_v31 }
 0x76b   :  { %2861 = vmatpush3.bf16.msra.mxu0 %v2858_v31 }
 0x76e   :  { %2676 = vmatmul.mubr.f32.vlgmr.msra.gmra.mrb[14].mxu0 %v1801_v46 }
 0x76f   :  { %3016 = shalt.err (!%p3013_p0)
}
 0x770   :  { %s3017_s14 = scalar_lea.hbm %s3831_s15, 256 }
 0x771   :  { %p3018_p1 = scmp.ne.s32.totalorder %s3831_s15, %s3017_s14  ;;  %p3021_p2 = scmp.lt.u32.totalorder %s3017_s14, %s3831_s15 }
 0x773   :  { %p3023_p3 = pnand %p3021_p2, %p3018_p1 }
 0x775   :  { %3026 = shalt.err (!%p3023_p3)
}
 0x776   :  { %1995 = dma.vmem_to_hbm [thread:$0]  %s1990_s10, 256, %s3831_s15, [#allocation4], %s3059_s18, %s3059_s18, %s3060_s19   ;;  %vm1981_vm0 = vcmask 519168  }
 0x777   :  { %s3067_s2 = smov [#allocation9]  }
 0x778   :  { %s2001_s3 = sshll.u32 %s3067_s2, 4  ;;  %s2002_s3 = int_to_ptr.vmem [resolvable:$true] %s2001_s3 }
 0x779   :  { %s3027_s12 = scalar_lea.vmem %s2002_s3, 128  ;;  %p3032_p5 = scmp.lt.s32.totalorder %s2002_s3, %s2002_s3 }
 0x77a   :  { %p3028_p4 = scmp.ne.s32.totalorder %s2002_s3, %s3027_s12  ;;  %p3033_p6 = scmp.lt.s32.totalorder %s3027_s12, %s3027_s12 }
 0x77c   :  { %p3034_p7 = por %p3033_p6, %p3032_p5 }
 0x77e   :  { %p3035_p8 = pnand %p3034_p7, %p3028_p4 }
 0x821   :  { %v2642_v54 = vpop.f32.mrb[12].mxu0 }
 0x822   :  { %v1870_v32 = vpop.f32.mrb[13].mxu0 }
 0x841   :  { %v2677_v4 = vpop.f32.mrb[14].mxu0 }
 0x842   :  { %v1972_v33 = vmax.f32 %v2642_v54, %v2677_v4  ;;  %v1962_v51 = vpop.f32.mrb[15].mxu0 }
 0x843   :  { %v1971_v34 = vmax.f32 %v1870_v32, %v1962_v51 }
 0x844   :  { %v2134_v14 = vpack.c.bf16 %v1972_v33, %v1972_v33 }
 0x845   :  { %v2133_v26 = vpack.c.bf16 %v1971_v34, %v1971_v34 }
 0x846   :  { %1983 = vst.msk [vmem:[#allocation9 + $0x4] sm:$0xf] %vm1981_vm0, %v2134_v14 }
 0x847   :  { %1982 = vst.msk [vmem:[#allocation9] sm:$0xf] %vm1981_vm0, %v2133_v26 }
 0x848   :  { %3038 = shalt.err (!%p3035_p8)
}
 0x849   :  { %s3039_s20 = scalar_lea.hbm %s3832_s16, 128 }
 0x84a   :  { %p3040_p9 = scmp.ne.s32.totalorder %s3832_s16, %s3039_s20  ;;  %p3043_p10 = scmp.lt.u32.totalorder %s3039_s20, %s3832_s16 }
 0x84c   :  { %p3045_p11 = pnand %p3043_p10, %p3040_p9 }
 0x84e   :  { %3048 = shalt.err (!%p3045_p11)
}
 0x84f   :  { %2007 = dma.vmem_to_hbm [thread:$0]  %s2002_s3, 128, %s3832_s16, [#allocation10], %s3059_s18, %s3059_s18, %s3060_s19  }
 0x850   :  { %3053 = dma.done.wait [#allocation4], 256  }
 0x851   :  { %3054 = vsyncadd [#allocation4], 4294967040 }
 0x852   :  { %3055 = dma.done.wait [#allocation10], 128  }
 0x853   :  { %3056 = vsyncadd [#allocation10], 4294967168 }
 0x854   :  { %2014 = vsyncpa [#allocation3], 1 }
 0x855   :  { %2015 = vsyncpa [#allocation6], 1 }
 0x856   :  { %2016 = vsyncpa [#allocation4], 1 }
 0x857   :  { %2017 = vsyncpa [#allocation10], 1 }

</bundles_post_ra>
